<compile_context>
chip_gen: v5e
topology: v5e:2x2
jax: 0.10.0
libtpu: 0.0.40
codegen_flags: <defaults>
</compile_context>

<pallas_src>
import functools

import jax
import jax.numpy as jnp
from jax.experimental import pallas as pl
from jax.experimental.pallas import tpu as pltpu


# ---------------------------------------------------------------------------
# Config (small synthetic shapes consistent with the module's __init__)
# ---------------------------------------------------------------------------
N_AGENTS = 4
N_ACTIONS = 6
STATE_DIM = 24                          # prod(state_shape)
ACTION_DIM = N_AGENTS * N_ACTIONS       # 24
SA_DIM = STATE_DIM + ACTION_DIM         # 48
N_HEAD = 4
EMBED_DIM = 32
HA = N_HEAD * N_AGENTS                  # 16
FUSED_OUT = EMBED_DIM + 3 * HA          # 80  [V-hidden | keys_rep | agents | action]
EPI_COLS = EMBED_DIM + HA + N_AGENTS    # 52  [w2 | ones(HA) | ones(A)]

BS = 2
T = 8

SMALL_N = 512                           # below this: one 128-aligned tile
VMEM_LIMIT_BYTES = 48 << 20             # > 32 MiB scoped default, < v7x 64 MiB physical

_TRANS_B = (((1,), (1,)), ((), ()))     # contract on last dim of both operands


def _max_tile_n():
    """Rows per grid step at scale, re-derived per chip generation."""
    try:
        vmem_bytes = pltpu.get_tpu_info().vmem_capacity_bytes
    except Exception:  # pragma: no cover - conservative fallback
        vmem_bytes = 64 << 20
    # v5e/v6e (128 MiB VMEM) comfortably fit 4096-row tiles; v7x (64 MiB) -> 2048.
    return 4096 if vmem_bytes >= (96 << 20) else 2048


# ---------------------------------------------------------------------------
# Kernel
# ---------------------------------------------------------------------------
def _fop_kernel(sa_ref, qs_ref, vs_ref, wf_ref, bf_ref, epi_ref, out_ref,
                *, n_agents, n_head, embed_dim):
    e = embed_dim
    ha = n_head * n_agents

    x = sa_ref[...]                                   # (TILE_N, SA_DIM) bf16
    qs = qs_ref[...]                                  # (TILE_N, A)      f32
    vsf = vs_ref[...]                                 # (TILE_N, A)      f32

    # --- single fused bf16 MXU pass for all first-stage linears -------------
    # columns of z: [ V-hidden (E) | keys replicated per agent (HA)
    #               | agents logits (HA) | action logits (HA) ]
    z = jnp.dot(x, wf_ref[...], preferred_element_type=jnp.float32) + bf_ref[...]

    hid = jnp.maximum(z[:, :e], 0.0)                              # (TILE_N, E)
    keys_rep = z[:, e:e + ha]                                     # (TILE_N, HA)
    ag = jax.nn.sigmoid(z[:, e + ha:e + 2 * ha])                  # (TILE_N, HA)
    ac = jax.nn.sigmoid(z[:, e + 2 * ha:e + 3 * ha])              # (TILE_N, HA)

    # --- full-width lambda weights (no per-head loop) ------------------------
    lam_flat = (jnp.abs(keys_rep) + 1e-10) * ag * ac              # (TILE_N, HA)

    # sum_a comb, with comb = (qs-vs)*(lam-1) + qs = dq*lam + vs:
    #   sum_a dq_a*lam_a = sum over all HA columns of lam_flat * dq replicated
    dq = qs - vsf                                                  # (TILE_N, A)
    dq_rep = jnp.concatenate([dq] * n_head, axis=1)                # (TILE_N, HA)
    weighted = lam_flat * dq_rep                                   # (TILE_N, HA)

    # --- single fused, lane-dense epilogue dot --------------------------------
    #   out_row = [w2 | 1_HA | 1_A] @ [hid | weighted | vs]^T  + b2
    rhs = jnp.concatenate([hid, weighted, vsf], axis=1)            # (TILE_N, EPI)
    epi = epi_ref[...]                                             # (1, EPI+1) f32
    lhs = jnp.broadcast_to(epi[:, :e + ha + n_agents],
                           (8, e + ha + n_agents))                 # (8, EPI)
    b2 = epi[:, e + ha + n_agents:e + ha + n_agents + 1]           # (1, 1)

    acc = jax.lax.dot_general(lhs, rhs, _TRANS_B,
                              preferred_element_type=jnp.float32)  # (8, TILE_N)
    out_ref[...] = acc[0:1, :] + b2                                # (1, TILE_N)


# ---------------------------------------------------------------------------
# Wrapper
# ---------------------------------------------------------------------------
def _round_up(x, m):
    return ((x + m - 1) // m) * m


def _pack_params(p):
    """Fuse the 11 per-layer weights into 3 resident slabs (wf bf16, bf/epi f32)."""
    kw_rep = jnp.repeat(p["kw"], N_AGENTS, axis=1)        # (STATE_DIM, HA)
    kb_rep = jnp.repeat(p["kb"], N_AGENTS, axis=1)        # (1, HA)
    zero_block = jnp.zeros((ACTION_DIM, EMBED_DIM + 2 * HA), jnp.float32)
    wf = jnp.concatenate([
        jnp.concatenate([p["w1"], kw_rep, p["aw"], p["cws"]], axis=1),  # state rows
        jnp.concatenate([zero_block, p["cwa"]], axis=1),                # action rows
    ], axis=0).astype(jnp.bfloat16)                                     # (SA_DIM, FUSED_OUT)
    bf = jnp.concatenate([p["b1"], kb_rep, p["ab"], p["cb"]], axis=1)   # (1, FUSED_OUT) f32
    ones = jnp.ones((1, HA + N_AGENTS), jnp.float32)
    epi = jnp.concatenate([p["w2"].T, ones, p["b2"]], axis=1)           # (1, EPI_COLS+1) f32
    return wf, bf, epi


def _select_tile(n, max_tile_n):
    if n <= SMALL_N:
        # 128-aligned single tile: lane-aligned (8, tile) epilogue dot + unmasked stores.
        return _round_up(n, 128)
    # >= 2 tiles so dimension_semantics=("parallel",) can feed both v7x TensorCores.
    half = _round_up(-(-n // 2), 128)
    return min(max_tile_n, half)


def fop_mixer(agent_qs, states, actions, vs, params):
    """agent_qs/vs: (bs, T, n_agents); states: (bs, T, state_dim); actions: (bs, T, action_dim)."""
    bs, t, _ = agent_qs.shape
    n = bs * t

    tile_n = _select_tile(n, _max_tile_n())
    padded_n = _round_up(n, tile_n)
    num_tiles = padded_n // tile_n

    states_f = states.reshape(n, STATE_DIM).astype(jnp.float32)
    actions_f = actions.reshape(n, ACTION_DIM).astype(jnp.float32)
    # bf16 streaming of the dominant per-row stream (~43% less HBM traffic);
    # qs/vs stay f32 (small, and they feed the output directly).
    sa = jnp.concatenate([states_f, actions_f], axis=1).astype(jnp.bfloat16)
    qs = agent_qs.reshape(n, N_AGENTS).astype(jnp.float32)
    vsf = vs.reshape(n, N_AGENTS).astype(jnp.float32)

    def pad_rows(x):
        if padded_n == n:
            return x
        return jnp.concatenate(
            [x, jnp.zeros((padded_n - n, x.shape[1]), x.dtype)], axis=0)

    sa, qs, vsf = pad_rows(sa), pad_rows(qs), pad_rows(vsf)
    wf, bf, epi = _pack_params(params)

    row_spec = lambda d: pl.BlockSpec((tile_n, d), lambda i: (i, 0))
    full_spec = lambda shape: pl.BlockSpec(shape, lambda i: (0, 0))
    # TODO(synk): if a profile still shows exposed DMA on the row streams at
    # large N, add pipeline_mode=pl.Buffered(3) to the three row_specs.

    kernel = functools.partial(_fop_kernel, n_agents=N_AGENTS, n_head=N_HEAD,
                               embed_dim=EMBED_DIM)

    out = pl.pallas_call(
        kernel,
        out_shape=jax.ShapeDtypeStruct((num_tiles, tile_n), jnp.float32),
        grid=(num_tiles,),
        in_specs=[
            row_spec(SA_DIM),
            row_spec(N_AGENTS),
            row_spec(N_AGENTS),
            full_spec(wf.shape),
            full_spec(bf.shape),
            full_spec(epi.shape),
        ],
        out_specs=pl.BlockSpec((1, tile_n), lambda i: (i, 0)),
        compiler_params=pltpu.CompilerParams(
            dimension_semantics=("parallel",),
            vmem_limit_bytes=VMEM_LIMIT_BYTES),
    )(sa, qs, vsf, wf, bf, epi)

    # Padded rows carry garbage (relu(b1) etc.); they are sliced off here and
    # must never be reduced over by a downstream consumer.
    return out.reshape(padded_n)[:n].reshape(bs, t, 1)


# ---------------------------------------------------------------------------
# Deterministic parameter init + pure-JAX references
# ---------------------------------------------------------------------------
def make_params(key):
    def linear(k, fan_in, fan_out):
        k1, k2 = jax.random.split(k)
        bound = 1.0 / jnp.sqrt(fan_in)
        w = jax.random.uniform(k1, (fan_in, fan_out), jnp.float32, -bound, bound)
        b = jax.random.uniform(k2, (1, fan_out), jnp.float32, -bound, bound)
        return w, b

    ks = jax.random.split(key, 6)
    w1, b1 = linear(ks[0], STATE_DIM, EMBED_DIM)
    w2, b2 = linear(ks[1], EMBED_DIM, 1)
    kw, kb = linear(ks[2], STATE_DIM, N_HEAD)          # stacked key extractors
    aw, ab = linear(ks[3], STATE_DIM, HA)              # stacked agents extractors
    cw, cb = linear(ks[4], SA_DIM, HA)                 # stacked action extractors
    return {
        "w1": w1, "b1": b1, "w2": w2, "b2": b2,
        "kw": kw, "kb": kb, "aw": aw, "ab": ab,
        "cws": cw[:STATE_DIM], "cwa": cw[STATE_DIM:], "cb": cb,
    }


def fop_mixer_ref(agent_qs, states, actions, vs, p, *, match_kernel_precision=False):
    """Pure-JAX reference.  match_kernel_precision=True quantizes the streamed
    inputs and the fused weight slab to bf16 exactly like the kernel does, so
    the comparison isolates kernel-math correctness from bf16 quantization."""
    if match_kernel_precision:
        q = lambda x: x.astype(jnp.bfloat16).astype(jnp.float32)
    else:
        q = lambda x: x
    bs, t, _ = agent_qs.shape
    n = bs * t
    s = q(states.reshape(n, STATE_DIM).astype(jnp.float32))
    a = q(actions.reshape(n, ACTION_DIM).astype(jnp.float32))
    qs = agent_qs.reshape(n, N_AGENTS).astype(jnp.float32)
    vsf = vs.reshape(n, N_AGENTS).astype(jnp.float32)
    w1, kw, aw, cws, cwa = q(p["w1"]), q(p["kw"]), q(p["aw"]), q(p["cws"]), q(p["cwa"])
    dot = lambda x, w: jnp.dot(x, w, precision=jax.lax.Precision.HIGHEST)

    hid = jnp.maximum(dot(s, w1) + p["b1"], 0.0)
    v = (dot(hid, p["w2"]) + p["b2"]) / N_AGENTS

    keys = dot(s, kw) + p["kb"]
    ag = jax.nn.sigmoid(dot(s, aw) + p["ab"])
    ac = jax.nn.sigmoid(dot(s, cws) + dot(a, cwa) + p["cb"])
    lam = jnp.zeros_like(qs)
    for hh in range(N_HEAD):
        lam = lam + ((jnp.abs(keys[:, hh:hh + 1]) + 1e-10)
                     * ag[:, hh * N_AGENTS:(hh + 1) * N_AGENTS]
                     * ac[:, hh * N_AGENTS:(hh + 1) * N_AGENTS])
    adv_tot = jnp.sum((qs - vsf) * (lam - 1.0), axis=1, keepdims=True)
    v_tot = jnp.sum(qs + v, axis=1, keepdims=True)
    return (adv_tot + v_tot).reshape(bs, t, 1)


# ---------------------------------------------------------------------------
if __name__ == "__main__":
    key = jax.random.PRNGKey(0)
    k_p, k_q, k_s, k_a, k_v = jax.random.split(key, 5)

    params = make_params(k_p)
    agent_qs = jax.random.normal(k_q, (BS, T, N_AGENTS), jnp.float32)
    states = jax.random.normal(k_s, (BS, T, STATE_DIM), jnp.float32)
    actions = jax.random.uniform(k_a, (BS, T, ACTION_DIM), jnp.float32)  # stand-in for one-hot actions
    vs = jax.random.normal(k_v, (BS, T, N_AGENTS), jnp.float32)

    out = fop_mixer(agent_qs, states, actions, vs, params)
    out = jax.block_until_ready(out)
    assert out.shape == (BS, T, 1)

    # Tight check against a precision-matched reference (proves kernel math).
    ref_match = fop_mixer_ref(agent_qs, states, actions, vs, params,
                              match_kernel_precision=True)
    assert jnp.allclose(out, ref_match, atol=2e-3, rtol=2e-3), (out, ref_match)

    # Loose check against the full-f32 reference (bf16 streaming of the
    # state/action slab trades ~1e-2-level precision for ~2x less HBM traffic).
    ref_f32 = fop_mixer_ref(agent_qs, states, actions, vs, params)
    assert jnp.allclose(out, ref_f32, atol=2e-1, rtol=1e-1), (out, ref_f32)

    print("KERNEL_OK")
</pallas_src>

<mosaic_0001>
module attributes {stable_mosaic.version = 11 : i64} {
  func.func @_fop_kernel(%arg0: i32, %arg1: memref<128x48xbf16, #tpu.memory_space<vmem>>, %arg2: memref<128x4xf32, #tpu.memory_space<vmem>>, %arg3: memref<128x4xf32, #tpu.memory_space<vmem>>, %arg4: memref<48x80xbf16, #tpu.memory_space<vmem>>, %arg5: memref<1x80xf32, #tpu.memory_space<vmem>>, %arg6: memref<1x53xf32, #tpu.memory_space<vmem>>, %arg7: memref<1x128xf32, #tpu.memory_space<vmem>>) attributes {dimension_semantics = [#tpu.dimension_semantics<parallel>], iteration_bounds = array<i64: 1>, scalar_prefetch = 0 : i64, scratch_operands = 0 : i64, tpu.core_type = #tpu.core_type<tc>, window_params = [{transform_indices = @transform_0, window_bounds = array<i64: 128, 48>}, {transform_indices = @transform_1, window_bounds = array<i64: 128, 4>}, {transform_indices = @transform_2, window_bounds = array<i64: 128, 4>}, {pipeline_mode = #tpu.pipeline_mode<synchronous>, transform_indices = @transform_3, window_bounds = array<i64: 48, 80>}, {pipeline_mode = #tpu.pipeline_mode<synchronous>, transform_indices = @transform_4, window_bounds = array<i64: 1, 80>}, {pipeline_mode = #tpu.pipeline_mode<synchronous>, transform_indices = @transform_5, window_bounds = array<i64: 1, 53>}, {transform_indices = @transform_6, window_bounds = array<i64: 1, 128>}]} {
    %c0 = arith.constant 0 : index
    %c0_0 = arith.constant 0 : index
    %0 = vector.load %arg1[%c0, %c0_0] : memref<128x48xbf16, #tpu.memory_space<vmem>>, vector<128x48xbf16>
    %c0_1 = arith.constant 0 : index
    %c0_2 = arith.constant 0 : index
    %1 = vector.load %arg2[%c0_1, %c0_2] : memref<128x4xf32, #tpu.memory_space<vmem>>, vector<128x4xf32>
    %c0_3 = arith.constant 0 : index
    %c0_4 = arith.constant 0 : index
    %2 = vector.load %arg3[%c0_3, %c0_4] : memref<128x4xf32, #tpu.memory_space<vmem>>, vector<128x4xf32>
    %c0_5 = arith.constant 0 : index
    %c0_6 = arith.constant 0 : index
    %3 = vector.load %arg4[%c0_5, %c0_6] : memref<48x80xbf16, #tpu.memory_space<vmem>>, vector<48x80xbf16>
    %cst = arith.constant dense<0.000000e+00> : vector<128x80xf32>
    %4 = tpu.matmul %0, %3, %cst {dimension_numbers = #tpu.dot_dimension_numbers<[1], [0], [0], [1], [0, 0, 1, 1], [], []>} : vector<128x48xbf16>, vector<48x80xbf16>, vector<128x80xf32> -> vector<128x80xf32>
    %c0_7 = arith.constant 0 : index
    %c0_8 = arith.constant 0 : index
    %5 = vector.load %arg5[%c0_7, %c0_8] : memref<1x80xf32, #tpu.memory_space<vmem>>, vector<1x80xf32>
    %6 = vector.broadcast %5 : vector<1x80xf32> to vector<128x80xf32>
    %7 = arith.addf %4, %6 : vector<128x80xf32>
    %8 = vector.extract_strided_slice %7 {offsets = [0, 0], sizes = [128, 32], strides = [1, 1]} : vector<128x80xf32> to vector<128x32xf32>
    %cst_9 = arith.constant 0.000000e+00 : f32
    %9 = vector.broadcast %cst_9 : f32 to vector<128x32xf32>
    %10 = arith.maximumf %8, %9 : vector<128x32xf32>
    %11 = vector.extract_strided_slice %7 {offsets = [0, 32], sizes = [128, 16], strides = [1, 1]} : vector<128x80xf32> to vector<128x16xf32>
    %12 = vector.extract_strided_slice %7 {offsets = [0, 48], sizes = [128, 16], strides = [1, 1]} : vector<128x80xf32> to vector<128x16xf32>
    %13 = arith.negf %12 : vector<128x16xf32>
    %14 = math.exp %13 : vector<128x16xf32>
    %cst_10 = arith.constant 1.000000e+00 : f32
    %15 = vector.broadcast %cst_10 : f32 to vector<128x16xf32>
    %16 = arith.addf %15, %14 : vector<128x16xf32>
    %17 = arith.divf %15, %16 : vector<128x16xf32>
    %18 = vector.extract_strided_slice %7 {offsets = [0, 64], sizes = [128, 16], strides = [1, 1]} : vector<128x80xf32> to vector<128x16xf32>
    %19 = arith.negf %18 : vector<128x16xf32>
    %20 = math.exp %19 : vector<128x16xf32>
    %cst_11 = arith.constant 1.000000e+00 : f32
    %21 = vector.broadcast %cst_11 : f32 to vector<128x16xf32>
    %22 = arith.addf %21, %20 : vector<128x16xf32>
    %23 = arith.divf %21, %22 : vector<128x16xf32>
    %24 = math.absf %11 : vector<128x16xf32>
    %cst_12 = arith.constant 1.000000e-10 : f32
    %25 = vector.broadcast %cst_12 : f32 to vector<128x16xf32>
    %26 = arith.addf %24, %25 : vector<128x16xf32>
    %27 = arith.mulf %26, %17 : vector<128x16xf32>
    %28 = arith.mulf %27, %23 : vector<128x16xf32>
    %29 = arith.subf %1, %2 : vector<128x4xf32>
    %30 = tpu.concatenate %29, %29, %29, %29 in 1 : vector<128x4xf32>, vector<128x4xf32>, vector<128x4xf32>, vector<128x4xf32> -> vector<128x16xf32>
    %31 = arith.mulf %28, %30 : vector<128x16xf32>
    %32 = tpu.concatenate %10, %31, %2 in 1 : vector<128x32xf32>, vector<128x16xf32>, vector<128x4xf32> -> vector<128x52xf32>
    %c0_13 = arith.constant 0 : index
    %c0_14 = arith.constant 0 : index
    %33 = vector.load %arg6[%c0_13, %c0_14] : memref<1x53xf32, #tpu.memory_space<vmem>>, vector<1x53xf32>
    %34 = vector.extract_strided_slice %33 {offsets = [0, 0], sizes = [1, 52], strides = [1, 1]} : vector<1x53xf32> to vector<1x52xf32>
    %35 = vector.shape_cast %34 : vector<1x52xf32> to vector<1x52xf32>
    %36 = vector.broadcast %35 : vector<1x52xf32> to vector<8x52xf32>
    %37 = vector.extract_strided_slice %33 {offsets = [0, 52], sizes = [1, 1], strides = [1, 1]} : vector<1x53xf32> to vector<1x1xf32>
    %cst_15 = arith.constant dense<0.000000e+00> : vector<8x128xf32>
    %38 = tpu.matmul %36, %32, %cst_15 {dimension_numbers = #tpu.dot_dimension_numbers<[1], [1], [0], [0], [0, 0, 1, 0], [], []>} : vector<8x52xf32>, vector<128x52xf32>, vector<8x128xf32> -> vector<8x128xf32>
    %39 = vector.extract_strided_slice %38 {offsets = [0, 0], sizes = [1, 128], strides = [1, 1]} : vector<8x128xf32> to vector<1x128xf32>
    %40 = vector.broadcast %37 : vector<1x1xf32> to vector<1x128xf32>
    %41 = arith.addf %39, %40 : vector<1x128xf32>
    %c0_16 = arith.constant 0 : index
    %c0_17 = arith.constant 0 : index
    %42 = vector.load %arg7[%c0_16, %c0_17] : memref<1x128xf32, #tpu.memory_space<vmem>>, vector<1x128xf32>
    tpu.vector_store %arg7[%c0_16, %c0_17], %41 {strides = array<i32>} : memref<1x128xf32, #tpu.memory_space<vmem>>, vector<1x128xf32>,
    return
  }
  func.func @transform_0(%arg0: i32) -> (i32, i32) {
    %c0_i32 = arith.constant 0 : i32
    %c0_i32_0 = arith.constant 0 : i32
    return %arg0, %c0_i32 : i32, i32
  }
  func.func @transform_1(%arg0: i32) -> (i32, i32) {
    %c0_i32 = arith.constant 0 : i32
    %c0_i32_0 = arith.constant 0 : i32
    return %arg0, %c0_i32 : i32, i32
  }
  func.func @transform_2(%arg0: i32) -> (i32, i32) {
    %c0_i32 = arith.constant 0 : i32
    %c0_i32_0 = arith.constant 0 : i32
    return %arg0, %c0_i32 : i32, i32
  }
  func.func @transform_3(%arg0: i32) -> (i32, i32) {
    %c0_i32 = arith.constant 0 : i32
    %c0_i32_0 = arith.constant 0 : i32
    %c0_i32_1 = arith.constant 0 : i32
    return %c0_i32, %c0_i32_0 : i32, i32
  }
  func.func @transform_4(%arg0: i32) -> (i32, i32) {
    %c0_i32 = arith.constant 0 : i32
    %c0_i32_0 = arith.constant 0 : i32
    %c0_i32_1 = arith.constant 0 : i32
    return %c0_i32, %c0_i32_0 : i32, i32
  }
  func.func @transform_5(%arg0: i32) -> (i32, i32) {
    %c0_i32 = arith.constant 0 : i32
    %c0_i32_0 = arith.constant 0 : i32
    %c0_i32_1 = arith.constant 0 : i32
    return %c0_i32, %c0_i32_0 : i32, i32
  }
  func.func @transform_6(%arg0: i32) -> (i32, i32) {
    %c0_i32 = arith.constant 0 : i32
    %c0_i32_0 = arith.constant 0 : i32
    return %arg0, %c0_i32 : i32, i32
  }
}

</mosaic_0001>

<bundles_post_ra>
// kernel: tpu_custom_call.1
= control target key start
LH: loop header
LB: loop body
LE: loop exit
PB: predicated region body
PF: predicated region fallthrough
CT: control target
= control target key end

     0   :  { %s1428_s29 = smov 4   ;;  %s1429_s30 = smov 12   ;;  %s2600_s0 = inlined_call_operand.vmem [shape: bf16[128,48], index: 0, kind: input, shape index: {}]   ;;  %s2601_s1 = inlined_call_operand.vmem [shape: f32[128,4], index: 1, kind: input, shape index: {}]   ;;  %s2602_s2 = inlined_call_operand.vmem [shape: f32[128,4], index: 2, kind: input, shape index: {}]   ;;  %s2603_s3 = inlined_call_operand.vmem [shape: bf16[48,80], index: 3, kind: input, shape index: {}]   ;;  %s2604_s4 = inlined_call_operand.vmem [shape: f32[1,80], index: 4, kind: input, shape index: {}]   ;;  %s2605_s5 = inlined_call_operand.vmem [shape: f32[1,53], index: 5, kind: input, shape index: {}]   ;;  %s2606_s6 = inlined_call_operand.hbm [shape: f32[1,128], index: 6, kind: output, shape index: {}]  }
   0x1   :  { %v1307_v0 = vld [vmem:[%s2603_s3 + $0x10] sm:$0xff]  ;;  %v56_v1 = vld [vmem:[%s2601_s1 + $0x78] sm:$0xff]  ;;  %v1306_v4 = vld [vmem:[%s2603_s3 + $0x8] sm:$0xff]  ;;  %s1430_s11 = smov 8  }
   0x2   :  { %v1481_v2 = vld [vmem:[%s2602_s2 + $0x78] sm:$0xff]  ;;  %171 = vmatpush.bf16.msra.mxu0 %v1307_v0  ;;  %1308 = vmatpush.bf16.msra.mxu2 %v1307_v0  ;;  %v55_v5 = vld [vmem:[%s2601_s1 + $0x70] sm:$0xff]  ;;  %v1305_v7 = vld [vmem:[%s2603_s3] sm:$0xff] }
   0x3   :  { %v1484_v3 = vsub.f32 %v56_v1, %v1481_v2  ;;  %1309 = vmatpush.bf16.msra.mxu3 %v1307_v0  ;;  %v1499_v6 = vld [vmem:[%s2602_s2 + $0x70] sm:$0xff] }
   0x4   :  { %v1507_v8 = vsub.f32 %v55_v5, %v1499_v6 }
   0x5   :  { %773 = vrot.lane.b32.xlu1 %v1484_v3, %s1428_s29  ;;  %869 = vrot.lane.b32.xlu0 %v1484_v3, %s1429_s30 }
   0x6   :  { %821 = vrot.lane.b32.xlu2 %v1484_v3, %s1430_s11  ;;  %172 = vmatpush.bf16.msra.mxu0 %v1306_v4 }
   0x7   :  { %1310 = vmatpush.bf16.msra.mxu2 %v1306_v4  ;;  %1311 = vmatpush.bf16.msra.mxu3 %v1306_v4 }
   0x8   :  { %11 = vsyncpa [#allocation3], 0  ;;  %v1297_v9 = vld [vmem:[%s2600_s0] sm:$0xff]  ;;  %v1300_v10 = vld [vmem:[%s2600_s0 + $0x18] sm:$0xff]  ;;  %vm141_vm0 = vcmask 392192   ;;  %s1431_s24 = smov 48  }
   0x9   :  { %v1303_v11 = vld [vmem:[%s2600_s0 + $0x30] sm:$0xff]  ;;  %v54_v12 = vld [vmem:[%s2601_s1 + $0x68] sm:$0xff]  ;;  %v53_v15 = vld [vmem:[%s2601_s1 + $0x60] sm:$0xff]  ;;  %vm887_vm1 = vcmask 31744   ;;  %vm904_vm2 = vcmask 64512   ;;  %vm921_vm3 = vcmask 97280  }
   0xa   :  { %173 = vmatpush.bf16.msra.mxu0 %v1305_v7  ;;  %v1528_v13 = vld [vmem:[%s2602_s2 + $0x68] sm:$0xff]  ;;  %v1550_v16 = vld [vmem:[%s2602_s2 + $0x60] sm:$0xff]  ;;  %v1304_v20 = vld [vmem:[%s2600_s0 + $0x38] sm:$0xff]  ;;  %s1432_s10 = smov 32   ;;  %s1434_s18 = smov 112  }
   0xb   :  { %1312 = vmatpush.bf16.msra.mxu2 %v1305_v7  ;;  %1313 = vmatpush.bf16.msra.mxu3 %v1305_v7  ;;  %v1536_v14 = vsub.f32 %v54_v12, %v1528_v13  ;;  %v1553_v17 = vsub.f32 %v53_v15, %v1550_v16  ;;  %v1298_v18 = vld [vmem:[%s2600_s0 + $0x8] sm:$0xff]  ;;  %v1301_v19 = vld [vmem:[%s2600_s0 + $0x20] sm:$0xff]  ;;  %v52_v21 = vld [vmem:[%s2601_s1 + $0x58] sm:$0xff]  ;;  %s1436_s3 = smov [#allocation2]  }
   0xc   :  { %v68_v22 = vld [vmem:[%s2602_s2 + $0x58] sm:$0xff]  ;;  %v51_v24 = vld [vmem:[%s2601_s1 + $0x50] sm:$0xff]  ;;  %v1302_v28 = vld [vmem:[%s2600_s0 + $0x28] sm:$0xff]  ;;  %s1201_s20 = sshll.u32 %s1436_s3, 4  ;;  %s1202_s20 = int_to_ptr.vmem [resolvable:$true] %s1201_s20 }
   0xd   :  { %771 = vrot.lane.b32.xlu1 %v1507_v8, %s1428_s29  ;;  %867 = vrot.lane.b32.xlu0 %v1507_v8, %s1429_s30  ;;  %v1579_v23 = vsub.f32 %v52_v21, %v68_v22  ;;  %v67_v25 = vld [vmem:[%s2602_s2 + $0x50] sm:$0xff]  ;;  %v50_v29 = vld [vmem:[%s2601_s1 + $0x48] sm:$0xff] }
   0xe   :  { %819 = vrot.lane.b32.xlu2 %v1507_v8, %s1430_s11  ;;  %1256 = vmatmul.msk.bf16.vlgmr.msra.gmra.mxu0 %vm141_vm0, %v1297_v9  ;;  %v1593_v26 = vsub.f32 %v51_v24, %v67_v25  ;;  %v1299_v27 = vld [vmem:[%s2600_s0 + $0x10] sm:$0xff]  ;;  %v66_v30 = vld [vmem:[%s2602_s2 + $0x48] sm:$0xff]  ;;  %v49_v32 = vld [vmem:[%s2601_s1 + $0x40] sm:$0xff] }
   0xf   :  { %1259 = vmatmul.msk.bf16.vlgmr.msra.gmra.mxu2 %vm141_vm0, %v1300_v10  ;;  %1262 = vmatmul.msk.bf16.vlgmr.msra.gmra.mxu3 %vm141_vm0, %v1303_v11  ;;  %v1615_v31 = vsub.f32 %v50_v29, %v66_v30  ;;  %v65_v33 = vld [vmem:[%s2602_s2 + $0x40] sm:$0xff]  ;;  %v48_v35 = vld [vmem:[%s2601_s1 + $0x38] sm:$0xff]  ;;  %v47_v38 = vld [vmem:[%s2601_s1 + $0x30] sm:$0xff] }
  0x10   :  { %v1629_v34 = vsub.f32 %v49_v32, %v65_v33  ;;  %v64_v36 = vld [vmem:[%s2602_s2 + $0x38] sm:$0xff]  ;;  %v63_v39 = vld [vmem:[%s2602_s2 + $0x30] sm:$0xff]  ;;  %v46_v41 = vld [vmem:[%s2601_s1 + $0x28] sm:$0xff] }
  0x11   :  { %v1643_v37 = vsub.f32 %v48_v35, %v64_v36  ;;  %v1657_v40 = vsub.f32 %v47_v38, %v63_v39  ;;  %v62_v42 = vld [vmem:[%s2602_s2 + $0x28] sm:$0xff]  ;;  %v45_v44 = vld [vmem:[%s2601_s1 + $0x20] sm:$0xff]  ;;  %v44_v47 = vld [vmem:[%s2601_s1 + $0x18] sm:$0xff] }
  0x12   :  { %v1671_v43 = vsub.f32 %v46_v41, %v62_v42  ;;  %v61_v45 = vld [vmem:[%s2602_s2 + $0x20] sm:$0xff]  ;;  %v60_v48 = vld [vmem:[%s2602_s2 + $0x18] sm:$0xff]  ;;  %v43_v53 = vld [vmem:[%s2601_s1 + $0x10] sm:$0xff] }
  0x13   :  { %v1685_v46 = vsub.f32 %v45_v44, %v61_v45  ;;  %v1699_v50 = vsub.f32 %v44_v47, %v60_v48  ;;  %v59_v54 = vld [vmem:[%s2602_s2 + $0x10] sm:$0xff]  ;;  %v42_v4 = vld [vmem:[%s2601_s1 + $0x8] sm:$0xff]  ;;  %v1753_v11 = vld [vmem:[%s2604_s4] ss:$0 sm:$0xff]  ;;  %s1433_s4 = smov 96  }
  0x14   :  { %v1724_v60 = vsub.f32 %v43_v53, %v59_v54  ;;  %v58_v5 = vld [vmem:[%s2602_s2 + $0x8] sm:$0xff] }
  0x15   :  { %769 = vrot.lane.b32.xlu1 %v1536_v14, %s1428_s29  ;;  %865 = vrot.lane.b32.xlu0 %v1536_v14, %s1429_s30  ;;  %v1755_v12 = vsub.f32 %v42_v4, %v58_v5 }
  0x16   :  { %817 = vrot.lane.b32.xlu2 %v1536_v14, %s1430_s11  ;;  %2635 = vst [vmem:[#allocation5_spill] sm:$0xff] %v1724_v60 }
  0x17   :  { %2636 = vst [vmem:[#allocation6_spill] sm:$0xff] %v1755_v12 }
  0x1d   :  { %767 = vrot.lane.b32.xlu1 %v1553_v17, %s1428_s29  ;;  %863 = vrot.lane.b32.xlu0 %v1553_v17, %s1429_s30 }
  0x1e   :  { %815 = vrot.lane.b32.xlu2 %v1553_v17, %s1430_s11  ;;  %1257 = vmatmul.msk.bf16.gmra.mxu0 %vm141_vm0, %v1298_v18 }
  0x1f   :  { %1260 = vmatmul.msk.bf16.gmra.mxu2 %vm141_vm0, %v1301_v19  ;;  %1263 = vmatmul.msk.bf16.gmra.mxu3 %vm141_vm0, %v1304_v20 }
  0x25   :  { %765 = vrot.lane.b32.xlu1 %v1579_v23, %s1428_s29  ;;  %861 = vrot.lane.b32.xlu0 %v1579_v23, %s1429_s30 }
  0x26   :  { %813 = vrot.lane.b32.xlu2 %v1579_v23, %s1430_s11 }
  0x2d   :  { %763 = vrot.lane.b32.xlu1 %v1593_v26, %s1428_s29  ;;  %859 = vrot.lane.b32.xlu0 %v1593_v26, %s1429_s30 }
  0x2e   :  { %811 = vrot.lane.b32.xlu2 %v1593_v26, %s1430_s11  ;;  %1258 = vmatmul.msk.bf16.gmra.mxu0 %vm141_vm0, %v1299_v27 }
  0x2f   :  { %1261 = vmatmul.msk.bf16.gmra.mxu2 %vm141_vm0, %v1302_v28 }
  0x35   :  { %761 = vrot.lane.b32.xlu1 %v1615_v31, %s1428_s29  ;;  %857 = vrot.lane.b32.xlu0 %v1615_v31, %s1429_s30 }
  0x36   :  { %809 = vrot.lane.b32.xlu2 %v1615_v31, %s1430_s11 }
  0x3d   :  { %759 = vrot.lane.b32.xlu1 %v1629_v34, %s1428_s29  ;;  %855 = vrot.lane.b32.xlu0 %v1629_v34, %s1429_s30 }
  0x3e   :  { %807 = vrot.lane.b32.xlu2 %v1629_v34, %s1430_s11 }
  0x45   :  { %757 = vrot.lane.b32.xlu1 %v1643_v37, %s1428_s29  ;;  %853 = vrot.lane.b32.xlu0 %v1643_v37, %s1429_s30 }
  0x46   :  { %805 = vrot.lane.b32.xlu2 %v1643_v37, %s1430_s11 }
  0x4d   :  { %755 = vrot.lane.b32.xlu1 %v1657_v40, %s1428_s29  ;;  %851 = vrot.lane.b32.xlu0 %v1657_v40, %s1429_s30 }
  0x4e   :  { %803 = vrot.lane.b32.xlu2 %v1657_v40, %s1430_s11 }
  0x55   :  { %849 = vrot.lane.b32.xlu1 %v1671_v43, %s1429_s30  ;;  %801 = vrot.lane.b32.xlu0 %v1671_v43, %s1430_s11 }
  0x56   :  { %753 = vrot.lane.b32.xlu2 %v1671_v43, %s1428_s29 }
  0x5d   :  { %751 = vrot.lane.b32.xlu1 %v1685_v46, %s1428_s29  ;;  %1064 = vrot.lane.b32.xlu0 %v1481_v2, %s1431_s24 }
  0x5e   :  { %799 = vrot.lane.b32.xlu2 %v1685_v46, %s1430_s11 }
  0x60   :  { %v822_v49 = vpop.permute.xlu2 %821 }
  0x65   :  { %847 = vrot.lane.b32.xlu1 %v1685_v46, %s1429_s30  ;;  %1062 = vrot.lane.b32.xlu0 %v1499_v6, %s1431_s24 }
  0x66   :  { %797 = vrot.lane.b32.xlu2 %v1699_v50, %s1430_s11 }
  0x68   :  { %v820_v51 = vpop.permute.xlu2 %819 }
  0x6d   :  { %749 = vrot.lane.b32.xlu1 %v1699_v50, %s1428_s29  ;;  %1060 = vrot.lane.b32.xlu0 %v1528_v13, %s1431_s24 }
  0x70   :  { %v818_v52 = vpop.permute.xlu2 %817 }
  0x75   :  { %845 = vrot.lane.b32.xlu1 %v1699_v50, %s1429_s30  ;;  %1058 = vrot.lane.b32.xlu0 %v1550_v16, %s1431_s24 }
  0x77   :  { %v774_v55 = vpop.permute.xlu1 %773  ;;  %v870_v57 = vpop.permute.xlu0 %869 }
  0x78   :  { %v903_v56 = vsel %vm887_vm1, %v1484_v3, %v774_v55  ;;  %v816_v58 = vpop.permute.xlu2 %815 }
  0x79   :  { %v920_v59 = vsel %vm904_vm2, %v903_v56, %v822_v49 }
  0x7a   :  { %v937_v61 = vsel %vm921_vm3, %v920_v59, %v870_v57 }
  0x7b   :  { %984 = vrot.lane.b32.xlu2 %v937_v61, %s1432_s10 }
  0x7d   :  { %747 = vrot.lane.b32.xlu1 %v1724_v60, %s1428_s29 }
  0x7f   :  { %v772_v62 = vpop.permute.xlu1 %771  ;;  %v868_v0 = vpop.permute.xlu0 %867 }
  0x80   :  { %v902_v63 = vsel %vm887_vm1, %v1507_v8, %v772_v62  ;;  %v1732_v1 = vpop.permute.xlu2 %813 }
  0x81   :  { %v919_v2 = vsel %vm904_vm2, %v902_v63, %v820_v51 }
  0x82   :  { %v936_v3 = vsel %vm921_vm3, %v919_v2, %v868_v0 }
  0x83   :  { %982 = vrot.lane.b32.xlu2 %v936_v3, %s1432_s10 }
  0x85   :  { %843 = vrot.lane.b32.xlu1 %v1724_v60, %s1429_s30 }
  0x87   :  { %v770_v6 = vpop.permute.xlu1 %769  ;;  %v866_v8 = vpop.permute.xlu0 %865 }
  0x88   :  { %v901_v7 = vsel %vm887_vm1, %v1536_v14, %v770_v6  ;;  %v1747_v9 = vpop.permute.xlu2 %811 }
  0x89   :  { %v918_v10 = vsel %vm904_vm2, %v901_v7, %v818_v52 }
  0x8a   :  { %v935_v13 = vsel %vm921_vm3, %v918_v10, %v866_v8 }
  0x8b   :  { %980 = vrot.lane.b32.xlu2 %v935_v13, %s1432_s10  ;;  %v175_v15 = vpop.f32.mrf.mxu0 }
  0x8c   :  { %v1760_v16 = vadd.f32 %v1753_v11, %v175_v15 }
  0x8d   :  { %745 = vrot.lane.b32.xlu1 %v1755_v12, %s1428_s29 }
  0x8e   :  { %v1264_v14 = vmul.f32 -1.442695, %v1760_v16 }
  0x8f   :  { %v768_v18 = vpop.permute.xlu1 %767  ;;  %v864_v30 = vpop.permute.xlu0 %863 }
  0x90   :  { %v1765_v19 = vpop.permute.xlu2 %809  ;;  %1327 = vpow2.f32 %v1264_v14  ;;  %v900_v21 = vsel %vm887_vm1, %v1553_v17, %v768_v18 }
  0x91   :  { %v917_v32 = vsel %vm904_vm2, %v900_v21, %v816_v58 }
  0x92   :  { %v190_v20 = vpop.f32.mrf.mxu2  ;;  %v205_v24 = vpop.f32.mrf.mxu3  ;;  %v934_v39 = vsel %vm921_vm3, %v917_v32, %v864_v30 }
  0x93   :  { %v1770_v22 = vadd.f32 %v1753_v11, %v190_v20  ;;  %795 = vrot.lane.b32.xlu2 %v1724_v60, %s1430_s11  ;;  %v1775_v25 = vadd.f32 %v1753_v11, %v205_v24  ;;  %v177_v27 = vpop.f32.mrf.mxu0 }
  0x94   :  { %v1779_v29 = vadd.f32 %v1753_v11, %v177_v27 }
  0x95   :  { %2637 = vst [vmem:[#allocation7_spill] sm:$0xff] %v1775_v25  ;;  %v1270_v28 = vmul.f32 -1.442695, %v1770_v22  ;;  %841 = vrot.lane.b32.xlu1 %v1755_v12, %s1429_s30  ;;  %v1276_v33 = vmul.f32 -1.442695, %v1775_v25 }
  0x96   :  { %2638 = vst [vmem:[#allocation8_spill] sm:$0xff] %v1779_v29  ;;  %v1328_v17 = vpop.eup %1327  ;;  %v1265_v35 = vmul.f32 -1.442695, %v1779_v29 }
  0x97   :  { %1329 = vpow2.f32 %v1270_v28  ;;  %v766_v36 = vpop.permute.xlu1 %765  ;;  %v1786_v38 = vadd.f32 1.0, %v1328_v17  ;;  %v862_v63 = vpop.permute.xlu0 %861 }
  0x98   :  { %1331 = vpow2.f32 %v1265_v35  ;;  %v1789_v41 = vpop.permute.xlu2 %807  ;;  %v899_v57 = vsel %vm887_vm1, %v1579_v23, %v766_v36 }
  0x99   :  { %1333 = vrcp.f32 %v1786_v38  ;;  %v916_v3 = vsel %vm904_vm2, %v899_v57, %v1732_v1  ;;  %v306_v4 = vand.u32 2147483648, %v1786_v38  ;;  %v304_v13 = vand.u32 2147483647, %v1786_v38 }
  0x9a   :  { %v192_v42 = vpop.f32.mrf.mxu2  ;;  %1335 = vpow2.f32 %v1276_v33  ;;  %v207_v45 = vpop.f32.mrf.mxu3  ;;  %v933_v24 = vsel %vm921_vm3, %v916_v3, %v862_v63  ;;  %vm300_vm5 = vweird.f32 %v1786_v38 }
  0x9b   :  { %v1793_v44 = vadd.f32 %v1753_v11, %v192_v42  ;;  %978 = vrot.lane.b32.xlu2 %v934_v39, %s1432_s10  ;;  %v180_v47 = vpop.f32.mrf.mxu0  ;;  %v1798_v51 = vadd.f32 %v1753_v11, %v207_v45  ;;  %v307_v28 = vor.u32 1.1754944e-38, %v306_v4  ;;  %vm305_vm7 = vcmp.eq.f32.partialorder %v304_v13, 8.507059e+37 }
  0x9c   :  { %v1825_v7 = vadd.f32 %v1753_v11, %v180_v47 }
  0x9d   :  { %2639 = vst [vmem:[#allocation9_spill] sm:$0xff] %v1793_v44  ;;  %v1330_v48 = vpop.eup %1329  ;;  %v1271_v49 = vmul.f32 -1.442695, %v1793_v44  ;;  %v1277_v59 = vmul.f32 -1.442695, %v1798_v51 }
  0x9e   :  { %2640 = vst [vmem:[#allocation10_spill] sm:$0xff] %v1798_v51  ;;  %v1800_v52 = vadd.f32 1.0, %v1330_v48  ;;  %v1332_v53 = vpop.eup %1331  ;;  %v1266_v17 = vmul.f32 -1.442695, %v1825_v7 }
  0x9f   :  { %1337 = vpow2.f32 %v1271_v49  ;;  %v1802_v54 = vpop.permute.xlu1 %763  ;;  %v1334_v55 = vpop.eup %1333  ;;  %v1805_v56 = vadd.f32 1.0, %v1332_v53  ;;  %2641 = vst [vmem:[#allocation11_spill] sm:$0xff] %v1825_v7 }
  0xa0   :  { %1339 = vrcp.f32 %v1800_v52  ;;  %v1336_v58 = vpop.eup %1335  ;;  %v296_v61 = vmul.f32 %v1334_v55, %v1786_v38  ;;  %v1820_v5 = vpop.permute.xlu2 %805  ;;  %vm301_vm4 = vweird.f32 %v1334_v55  ;;  %vm390_vm8 = vweird.f32 %v1800_v52 }
  0xa1   :  { %1341 = vrcp.f32 %v1805_v56  ;;  %v1822_v6 = vadd.f32 1.0, %v1336_v58  ;;  %vm302_vm6 = vmor %vm300_vm5, %vm301_vm4  ;;  %v319_v53 = vand.u32 2147483647, %v1805_v56  ;;  %v394_v57 = vand.u32 2147483647, %v1800_v52 }
  0xa2   :  { %v195_v62 = vpop.f32.mrf.mxu2  ;;  %v210_v2 = vpop.f32.mrf.mxu3  ;;  %v297_v23 = vsub.f32 1.0, %v296_v61  ;;  %1343 = vpow2.f32 %v1277_v59  ;;  %vm315_vm9 = vweird.f32 %v1805_v56  ;;  %v396_v3 = vand.u32 2147483648, %v1800_v52 }
  0xa3   :  { %v1813_v0 = vadd.f32 %v1753_v11, %v195_v62  ;;  %793 = vrot.lane.b32.xlu2 %v1755_v12, %s1430_s11  ;;  %v182_v8 = vpop.f32.mrf.mxu0  ;;  %v1828_v10 = vadd.f32 %v1753_v11, %v210_v2  ;;  %vm1885_vm12 = vcmp.eq.f32.partialorder %v319_v53, 8.507059e+37  ;;  %vm1890_vm13 = vcmp.eq.f32.partialorder %v394_v57, 8.507059e+37 }
  0xa4   :  { %v298_v14 = vmul.f32 %v1334_v55, %v297_v23  ;;  %v1846_v33 = vadd.f32 %v1753_v11, %v182_v8 }
  0xa5   :  { %2642 = vst [vmem:[#allocation12_spill] sm:$0xff] %v1828_v10  ;;  %v1338_v15 = vpop.eup %1337  ;;  %v1272_v1 = vmul.f32 -1.442695, %v1813_v0  ;;  %v1278_v21 = vmul.f32 -1.442695, %v1828_v10 }
  0xa6   :  { %v1832_v18 = vpop.eup %1339  ;;  %v1834_v20 = vadd.f32 1.0, %v1338_v15  ;;  %v299_v27 = vadd.f32 %v1334_v55, %v298_v14  ;;  %2643 = vst [vmem:[#allocation13_spill] sm:$0xff] %v1846_v33  ;;  %v1267_v58 = vmul.f32 -1.442695, %v1846_v33 }
  0xa7   :  { %1345 = vpow2.f32 %v1272_v1  ;;  %v1839_v30 = vpop.permute.xlu1 %761  ;;  %v1841_v32 = vpop.eup %1341  ;;  %v386_v35 = vmul.f32 %v1832_v18, %v1800_v52  ;;  %vm391_vm10 = vweird.f32 %v1832_v18 }
  0xa8   :  { %1347 = vrcp.f32 %v1834_v20  ;;  %v303_v36 = vsel %vm302_vm6, %v1334_v55, %v299_v27  ;;  %v311_v38 = vmul.f32 %v1841_v32, %v1805_v56  ;;  %v1344_v47 = vpop.eup %1343  ;;  %v321_v55 = vand.u32 2147483648, %v1805_v56  ;;  %v1873_v23 = vpop.permute.xlu2 %803  ;;  %vm1900_vm14 = vmor %vm390_vm8, %vm391_vm10 }
  0xa9   :  { %1349 = vrcp.f32 %v1822_v6  ;;  %v308_v39 = vsel %vm305_vm7, %v307_v28, %v303_v36  ;;  %v387_v45 = vsub.f32 1.0, %v386_v35  ;;  %v1877_v8 = vadd.f32 1.0, %v1344_v47 }
  0xaa   :  { %1351 = vpow2.f32 %v1278_v21  ;;  %v1853_v42 = vpop.f32.mrf.mxu2  ;;  %647 = vrot.lane.b32.xlu1 %v308_v39, %s1433_s4  ;;  %v212_v48 = vpop.f32.mrf.mxu3  ;;  %v312_v49 = vsub.f32 1.0, %v311_v38  ;;  %583 = vrot.lane.b32.xlu0 %v308_v39, %s1434_s18  ;;  %vm316_vm11 = vweird.f32 %v1841_v32  ;;  %v322_v21 = vor.u32 1.1754944e-38, %v321_v55 }
  0xab   :  { %976 = vrot.lane.b32.xlu2 %v933_v24, %s1432_s10  ;;  %1353 = vpow2.f32 %v1266_v17  ;;  %v185_v59 = vpop.f32.mrf.mxu0  ;;  %v388_v61 = vmul.f32 %v1832_v18, %v387_v45  ;;  %v1866_v63 = vadd.f32 %v1753_v11, %v212_v48  ;;  %vm317_vm15 = vmor %vm315_vm9, %vm316_vm11  ;;  %v397_v47 = vor.u32 1.1754944e-38, %v396_v3 }
  0xac   :  { %v1869_v2 = vadd.f32 %v1753_v11, %v185_v59  ;;  %v313_v15 = vmul.f32 %v1841_v32, %v312_v49  ;;  %1355 = vpow2.f32 %v1267_v58  ;;  %v411_v59 = vand.u32 2147483648, %v1834_v20 }
  0xad   :  { %v1346_v62 = vpop.eup %1345  ;;  %2644 = vst [vmem:[#allocation14_spill] sm:$0xff] %v1866_v63  ;;  %v389_v24 = vadd.f32 %v1832_v18, %v388_v61  ;;  %v1279_v39 = vmul.f32 -1.442695, %v1866_v63  ;;  %v1941_v3 = vadd.f32 %v1753_v11, %v1853_v42  ;;  %vm405_vm5 = vweird.f32 %v1834_v20 }
  0xae   :  { %v1875_v4 = vpop.eup %1347  ;;  %v1879_v13 = vadd.f32 1.0, %v1346_v62  ;;  %v1268_v17 = vmul.f32 -1.442695, %v1869_v2  ;;  %v314_v35 = vadd.f32 %v1841_v32, %v313_v15  ;;  %v412_v42 = vor.u32 1.1754944e-38, %v411_v59 }
  0xaf   :  { %v1883_v1 = vpop.eup %1349  ;;  %v401_v38 = vmul.f32 %v1875_v4, %v1834_v20  ;;  %v393_v45 = vsel %vm1900_vm14, %v1832_v18, %v389_v24  ;;  %v1913_v52 = vpop.permute.xlu1 %759  ;;  %vm406_vm4 = vweird.f32 %v1875_v4  ;;  %v409_v18 = vand.u32 2147483647, %v1834_v20  ;;  %2652 = vst [vmem:[#allocation16_spill] sm:$0xff] %v1941_v3 }
  0xb0   :  { %v1352_v28 = vpop.eup %1351  ;;  %1357 = vrcp.f32 %v1879_v13  ;;  %v318_v53 = vsel %vm317_vm15, %v1841_v32, %v314_v35  ;;  %v1925_v58 = vsel %vm1890_vm13, %v397_v47, %v393_v45  ;;  %v476_v61 = vmul.f32 %v1883_v1, %v1822_v6  ;;  %vm407_vm6 = vmor %vm405_vm5, %vm406_vm4 }
  0xb1   :  { %v1354_v48 = vpop.eup %1353  ;;  %1359 = vrcp.f32 %v1877_v8  ;;  %v1916_v49 = vadd.f32 1.0, %v1352_v28  ;;  %v402_v57 = vsub.f32 1.0, %v401_v38  ;;  %v1921_v56 = vsel %vm1885_vm12, %v322_v21, %v318_v53  ;;  %2651 = vst [vmem:[#allocation15_spill] sm:$0xff] %v1925_v58 }
  0xb2   :  { %v200_v55 = vpop.f32.mrf.mxu2  ;;  %1361 = vpow2.f32 %v1268_v17  ;;  %595 = vrot.lane.b32.xlu0 %v1925_v58, %s1434_s18  ;;  %v1937_v62 = vadd.f32 1.0, %v1354_v48  ;;  %v1356_v15 = vpop.eup %1355  ;;  %v477_v24 = vsub.f32 1.0, %v476_v61  ;;  %vm410_vm7 = vcmp.eq.f32.partialorder %v409_v18, 8.507059e+37 }
  0xb3   :  { %649 = vrot.lane.b32.xlu2 %v1921_v56, %s1433_s4  ;;  %v403_v32 = vmul.f32 %v1875_v4, %v402_v57  ;;  %1363 = vpow2.f32 %v1279_v39  ;;  %v1946_v14 = vadd.f32 %v1753_v11, %v200_v55  ;;  %v484_v28 = vand.u32 2147483647, %v1822_v6  ;;  %v1955_v17 = vpop.permute.xlu2 %753 }
  0xb4   :  { %1365 = vrcp.f32 %v1916_v49  ;;  %v486_v20 = vand.u32 2147483648, %v1822_v6  ;;  %v478_v38 = vmul.f32 %v1883_v1, %v477_v24  ;;  %vm480_vm8 = vweird.f32 %v1822_v6  ;;  %v1989_v24 = vpop.permute.xlu0 %859 }
  0xb5   :  { %2653 = vst [vmem:[#allocation17_spill] sm:$0xff] %v1946_v14  ;;  %v404_v21 = vadd.f32 %v1875_v4, %v403_v32  ;;  %vm481_vm9 = vweird.f32 %v1883_v1  ;;  %1367 = vrcp.f32 %v1937_v62  ;;  %v1964_v39 = vadd.f32 1.0, %v1356_v15 }
  0xb6   :  { %v1949_v27 = vpop.eup %1357  ;;  %v1273_v45 = vmul.f32 -1.442695, %v1941_v3  ;;  %v1274_v53 = vmul.f32 -1.442695, %v1946_v14  ;;  %vm1973_vm10 = vcmp.eq.f32.partialorder %v484_v28, 8.507059e+37  ;;  %vm482_vm11 = vmor %vm480_vm8, %vm481_vm9  ;;  %v487_v61 = vor.u32 1.1754944e-38, %v486_v20 }
  0xb7   :  { %v1957_v35 = vpop.eup %1359  ;;  %v408_v36 = vsel %vm407_vm6, %v1875_v4, %v404_v21  ;;  %v479_v4 = vadd.f32 %v1883_v1, %v478_v38  ;;  %v416_v18 = vmul.f32 %v1949_v27, %v1879_v13  ;;  %vm420_vm12 = vweird.f32 %v1879_v13  ;;  %v1985_v15 = vpop.permute.xlu1 %757 }
  0xb8   :  { %v1967_v47 = vsel %vm410_vm7, %v412_v42, %v408_v36  ;;  %v1362_v48 = vpop.eup %1361  ;;  %vm421_vm13 = vweird.f32 %v1949_v27  ;;  %v424_v36 = vand.u32 2147483647, %v1879_v13  ;;  %v426_v38 = vand.u32 2147483648, %v1879_v13 }
  0xb9   :  { %597 = vrot.lane.b32.xlu1 %v1967_v47, %s1434_s18  ;;  %v1364_v32 = vpop.eup %1363  ;;  %v1979_v59 = vadd.f32 1.0, %v1362_v48  ;;  %v483_v42 = vsel %vm482_vm11, %v1883_v1, %v479_v4  ;;  %v417_v28 = vsub.f32 1.0, %v416_v18  ;;  %1369 = vpow2.f32 %v1273_v45  ;;  %vm2010_vm14 = vmor %vm420_vm12, %vm421_vm13 }
  0xba   :  { %v202_v57 = vpop.f32.mrf.mxu2  ;;  %v1987_v21 = vpop.eup %1365  ;;  %v488_v6 = vsel %vm1973_vm10, %v487_v61, %v483_v42  ;;  %1371 = vrcp.f32 %v1964_v39  ;;  %v2004_v1 = vadd.f32 1.0, %v1364_v32  ;;  %v427_v4 = vor.u32 1.1754944e-38, %v426_v38 }
  0xbb   :  { %v1997_v20 = vadd.f32 %v1753_v11, %v202_v57  ;;  %607 = vrot.lane.b32.xlu0 %v488_v6, %s1434_s18  ;;  %v418_v48 = vmul.f32 %v1949_v27, %v417_v28  ;;  %v2002_v29 = vpop.eup %1367  ;;  %1373 = vpow2.f32 %v1274_v53  ;;  %v491_v55 = vmul.f32 %v1957_v35, %v1877_v8  ;;  %v2021_v61 = vpop.permute.xlu2 %799 }
  0xbc   :  { %1375 = vrcp.f32 %v1979_v59  ;;  %vm425_vm15 = vcmp.eq.f32.partialorder %v424_v36, 8.507059e+37  ;;  %v499_v18 = vand.u32 2147483647, %v1877_v8  ;;  %v501_v13 = vand.u32 2147483648, %v1877_v8  ;;  %v2060_v51 = vpop.permute.xlu0 %857 }
  0xbd   :  { %2656 = vst [vmem:[#allocation18_spill] sm:$0xff] %v1997_v20  ;;  %v419_v57 = vadd.f32 %v1949_v27, %v418_v48  ;;  %v1275_v53 = vmul.f32 -1.442695, %v1997_v20  ;;  %v492_v32 = vsub.f32 1.0, %v491_v55  ;;  %v506_v42 = vmul.f32 %v1987_v21, %v1916_v49 }
  0xbe   :  { %vm496_vm4 = vweird.f32 %v1957_v35  ;;  %vm510_vm5 = vweird.f32 %v1916_v49  ;;  %vm511_vm6 = vweird.f32 %v1987_v21  ;;  %v514_v44 = vand.u32 2147483647, %v1916_v49 }
  0xbf   :  { %v423_v28 = vsel %vm2010_vm14, %v1949_v27, %v419_v57  ;;  %v1370_v36 = vpop.eup %1369  ;;  %v493_v48 = vmul.f32 %v1957_v35, %v492_v32  ;;  %v507_v55 = vsub.f32 1.0, %v506_v42  ;;  %vm495_vm7 = vweird.f32 %v1877_v8  ;;  %v187_v57 = vpop.f32.mrf.mxu0  ;;  %vm2067_vm11 = vmor %vm510_vm5, %vm511_vm6 }
  0xc0   :  { %v2031_v38 = vsel %vm425_vm15, %v427_v4, %v423_v28  ;;  %v2035_v3 = vpop.eup %1371  ;;  %vm2040_vm8 = vcmp.eq.f32.partialorder %v499_v18, 8.507059e+37  ;;  %v516_v45 = vand.u32 2147483648, %v1916_v49  ;;  %v326_v4 = vmul.f32 %v2002_v29, %v1937_v62  ;;  %vm2050_vm9 = vmor %vm495_vm7, %vm496_vm4  ;;  %v2056_v14 = vpop.permute.xlu1 %755 }
  0xc1   :  { %599 = vrot.lane.b32.xlu2 %v2031_v38, %s1434_s18  ;;  %v1374_v32 = vpop.eup %1373  ;;  %v494_v42 = vadd.f32 %v1957_v35, %v493_v48  ;;  %v502_v8 = vor.u32 1.1754944e-38, %v501_v13  ;;  %v508_v18 = vmul.f32 %v1987_v21, %v507_v55  ;;  %vm330_vm10 = vweird.f32 %v1937_v62 }
  0xc2   :  { %v2058_v20 = vpop.eup %1375  ;;  %vm2071_vm12 = vcmp.eq.f32.partialorder %v514_v44, 8.507059e+37  ;;  %v517_v55 = vor.u32 1.1754944e-38, %v516_v45  ;;  %v327_v63 = vsub.f32 1.0, %v326_v4  ;;  %vm331_vm13 = vweird.f32 %v2002_v29 }
  0xc3   :  { %671 = vrot.lane.b32.xlu0 %v488_v6, %s1433_s4  ;;  %v498_v6 = vsel %vm2050_vm9, %v1957_v35, %v494_v42  ;;  %v509_v10 = vadd.f32 %v1987_v21, %v508_v18  ;;  %v336_v49 = vand.u32 2147483648, %v1937_v62  ;;  %v2082_v12 = vadd.f32 %v1753_v11, %v187_v57  ;;  %vm2103_vm14 = vmor %vm330_vm10, %vm331_vm13 }
  0xc4   :  { %v503_v44 = vsel %vm2040_vm8, %v502_v8, %v498_v6  ;;  %v328_v33 = vmul.f32 %v2002_v29, %v327_v63  ;;  %1377 = vrcp.f32 %v2004_v1  ;;  %v334_v45 = vand.u32 2147483647, %v1937_v62 }
  0xc5   :  { %2667 = vst [vmem:[#allocation19_spill] sm:$0xff] %v2082_v12  ;;  %609 = vrot.lane.b32.xlu1 %v503_v44, %s1434_s18  ;;  %v513_v35 = vsel %vm2067_vm11, %v1987_v21, %v509_v10  ;;  %v1269_v4 = vmul.f32 -1.442695, %v2082_v12  ;;  %1379 = vpow2.f32 %v1275_v53  ;;  %v356_v10 = vmul.f32 %v2058_v20, %v1979_v59  ;;  %v2109_v53 = vpop.permute.xlu2 %797 }
  0xc6   :  { %v2096_v11 = vsel %vm2071_vm12, %v517_v55, %v513_v35  ;;  %v329_v27 = vadd.f32 %v2002_v29, %v328_v33  ;;  %v337_v21 = vor.u32 1.1754944e-38, %v336_v49  ;;  %vm360_vm15 = vweird.f32 %v1979_v59  ;;  %v2139_v35 = vpop.permute.xlu0 %855 }
  0xc7   :  { %1381 = vpow2.f32 %v1269_v4  ;;  %v366_v57 = vand.u32 2147483648, %v1979_v59  ;;  %v357_v33 = vsub.f32 1.0, %v356_v10  ;;  %vm361_vm4 = vweird.f32 %v2058_v20 }
  0xc8   :  { %v364_v62 = vand.u32 2147483647, %v1979_v59  ;;  %v341_v42 = vmul.f32 %v2035_v3, %v1964_v39  ;;  %v2119_v28 = vadd.f32 1.0, %v1370_v36  ;;  %v333_v8 = vsel %vm2103_vm14, %v2002_v29, %v329_v27  ;;  %vm2133_vm6 = vmor %vm360_vm15, %vm361_vm4  ;;  %v2137_v49 = vpop.permute.xlu1 %849 }
  0xc9   :  { %611 = vrot.lane.b32.xlu2 %v2096_v11, %s1434_s18  ;;  %vm335_vm5 = vcmp.eq.f32.partialorder %v334_v45, 8.507059e+37  ;;  %v358_v18 = vmul.f32 %v2058_v20, %v357_v33  ;;  %v2129_v55 = vadd.f32 1.0, %v1374_v32  ;;  %v367_v6 = vor.u32 1.1754944e-38, %v366_v57 }
  0xca   :  { %v342_v48 = vsub.f32 1.0, %v341_v42  ;;  %v2127_v13 = vpop.eup %1377  ;;  %vm365_vm7 = vcmp.eq.f32.partialorder %v364_v62, 8.507059e+37  ;;  %1383 = vrcp.f32 %v2119_v28  ;;  %vm345_vm8 = vweird.f32 %v1964_v39 }
  0xcb   :  { %585 = vrot.lane.b32.xlu0 %v1921_v56, %s1434_s18  ;;  %v1380_v29 = vpop.eup %1379  ;;  %v338_v56 = vsel %vm335_vm5, %v337_v21, %v333_v8  ;;  %v359_v45 = vadd.f32 %v2058_v20, %v358_v18  ;;  %vm346_vm9 = vweird.f32 %v2035_v3  ;;  %v351_v10 = vand.u32 2147483648, %v1964_v39 }
  0xcc   :  { %v343_v4 = vmul.f32 %v2035_v3, %v342_v48  ;;  %1385 = vrcp.f32 %v2129_v55  ;;  %v2155_v21 = vadd.f32 1.0, %v1380_v29  ;;  %v349_v33 = vand.u32 2147483647, %v1964_v39  ;;  %vm347_vm10 = vmor %vm345_vm8, %vm346_vm9 }
  0xcd   :  { %v1382_v32 = vpop.eup %1381  ;;  %587 = vrot.lane.b32.xlu1 %v338_v56, %s1434_s18  ;;  %v363_v27 = vsel %vm2133_vm6, %v2058_v20, %v359_v45  ;;  %v521_v20 = vmul.f32 %v2127_v13, %v2004_v1  ;;  %v352_v8 = vor.u32 1.1754944e-38, %v351_v10  ;;  %vm525_vm12 = vweird.f32 %v2004_v1 }
  0xce   :  { %v2147_v59 = vadd.f32 1.0, %v1382_v32  ;;  %v344_v63 = vadd.f32 %v2035_v3, %v343_v4  ;;  %v368_v57 = vsel %vm365_vm7, %v367_v6, %v363_v27  ;;  %vm350_vm11 = vcmp.eq.f32.partialorder %v349_v33, 8.507059e+37  ;;  %v2174_v29 = vpop.permute.xlu0 %853  ;;  %v2184_v4 = vld [vmem:[%s2602_s2] sm:$0xff] }
  0xcf   :  { %2673 = vst [vmem:[#allocation21_spill] sm:$0xff] %v2184_v4  ;;  %vm526_vm13 = vweird.f32 %v2127_v13  ;;  %vm435_vm7 = vweird.f32 %v2119_v28  ;;  %v441_v60 = vand.u32 2147483648, %v2119_v28  ;;  %v439_v25 = vand.u32 2147483647, %v2119_v28 }
  0xd0   :  { %1387 = vrcp.f32 %v2147_v59  ;;  %v348_v62 = vsel %vm347_vm10, %v2035_v3, %v344_v63  ;;  %v2166_v18 = vpop.eup %1383  ;;  %v2172_v36 = vpop.permute.xlu1 %751  ;;  %v522_v3 = vsub.f32 1.0, %v521_v20  ;;  %vm375_vm14 = vweird.f32 %v2147_v59  ;;  %vm2209_vm4 = vmor %vm525_vm12, %vm526_vm13 }
  0xd1   :  { %591 = vrot.lane.b32.xlu2 %v368_v57, %s1434_s18  ;;  %1389 = vrcp.f32 %v2155_v21  ;;  %v353_v39 = vsel %vm350_vm11, %v352_v8, %v348_v62  ;;  %v431_v45 = vmul.f32 %v2166_v18, %v2119_v28  ;;  %vm436_vm8 = vweird.f32 %v2166_v18 }
  0xd2   :  { %v2169_v48 = vpop.eup %1385  ;;  %v523_v10 = vmul.f32 %v2127_v13, %v522_v3  ;;  %vm450_vm10 = vweird.f32 %v2129_v55  ;;  %vm2248_vm12 = vmor %vm435_vm7, %vm436_vm8  ;;  %vm1082_vm8 = vcmask 261120  }
  0xd3   :  { %673 = vrot.lane.b32.xlu0 %v503_v44, %s1433_s4  ;;  %v41_v44 = vld [vmem:[%s2601_s1] sm:$0xff]  ;;  %v446_v62 = vmul.f32 %v2169_v48, %v2129_v55  ;;  %v432_v8 = vsub.f32 1.0, %v431_v45  ;;  %v381_v45 = vand.u32 2147483648, %v2147_v59  ;;  %vm451_vm11 = vweird.f32 %v2169_v48 }
  0xd4   :  { %v2197_v20 = vsub.f32 %v41_v44, %v2184_v4  ;;  %vm2259_vm13 = vmor %vm450_vm10, %vm451_vm11 }
  0xd5   :  { %v2161_v42 = vpop.permute.xlu2 %984  ;;  %589 = vrot.lane.b32.xlu1 %v353_v39, %s1434_s18  ;;  %v447_v44 = vsub.f32 1.0, %v446_v62 }
  0xd6   :  { %2672 = vst [vmem:[#allocation20_spill] sm:$0xff] %v2161_v42  ;;  %v1388_v6 = vpop.eup %1387  ;;  %v531_v42 = vand.u32 2147483648, %v2004_v1 }
  0xd7   :  { %v371_v32 = vmul.f32 %v1388_v6, %v2147_v59  ;;  %v2188_v27 = vpop.eup %1389  ;;  %vm376_vm15 = vweird.f32 %v1388_v6  ;;  %v448_v58 = vmul.f32 %v2169_v48, %v447_v44  ;;  %v454_v44 = vand.u32 2147483647, %v2129_v55 }
  0xd8   :  { %v461_v3 = vmul.f32 %v2188_v27, %v2155_v21  ;;  %v2219_v7 = vpop.permute.xlu1 %847  ;;  %vm2221_vm6 = vmor %vm375_vm14, %vm376_vm15  ;;  %vm440_vm14 = vcmp.eq.f32.partialorder %v439_v25, 8.507059e+37  ;;  %vm465_vm15 = vweird.f32 %v2155_v21 }
  0xd9   :  { %655 = vrot.lane.b32.xlu2 %v368_v57, %s1433_s4  ;;  %v372_v33 = vsub.f32 1.0, %v371_v32  ;;  %v529_v57 = vand.u32 2147483647, %v2004_v1  ;;  %v379_v1 = vand.u32 2147483647, %v2147_v59  ;;  %v442_v32 = vor.u32 1.1754944e-38, %v441_v60 }
  0xda   :  { %v462_v59 = vsub.f32 1.0, %v461_v3 }
  0xdb   :  { %651 = vrot.lane.b32.xlu0 %v338_v56, %s1433_s4  ;;  %v373_v12 = vmul.f32 %v1388_v6, %v372_v33  ;;  %v524_v56 = vadd.f32 %v2127_v13, %v523_v10  ;;  %vm2215_vm5 = vcmp.eq.f32.partialorder %v529_v57, 8.507059e+37  ;;  %v2225_v10 = vpop.permute.xlu0 %851  ;;  %v382_v57 = vor.u32 1.1754944e-38, %v381_v45 }
  0xdc   :  { %vm380_vm9 = vcmp.eq.f32.partialorder %v379_v1, 8.507059e+37  ;;  %v449_v45 = vadd.f32 %v2169_v48, %v448_v58 }
  0xdd   :  { %v2190_v63 = vpop.permute.xlu2 %982  ;;  %653 = vrot.lane.b32.xlu1 %v353_v39, %s1433_s4  ;;  %v374_v33 = vadd.f32 %v1388_v6, %v373_v12  ;;  %v532_v12 = vor.u32 1.1754944e-38, %v531_v42  ;;  %v528_v62 = vsel %vm2209_vm4, %v2127_v13, %v524_v56  ;;  %v463_v56 = vmul.f32 %v2188_v27, %v462_v59 }
  0xde   :  { %2674 = vst [vmem:[#allocation22_spill] sm:$0xff] %v2190_v63  ;;  %v433_v63 = vmul.f32 %v2166_v18, %v432_v8  ;;  %vm466_vm4 = vweird.f32 %v2188_v27  ;;  %v453_v1 = vsel %vm2259_vm13, %v2169_v48, %v449_v45 }
  0xdf   :  { %v378_v42 = vsel %vm2221_vm6, %v1388_v6, %v374_v33  ;;  %v456_v6 = vand.u32 2147483648, %v2129_v55  ;;  %v471_v33 = vand.u32 2147483648, %v2155_v21  ;;  %v464_v60 = vadd.f32 %v2188_v27, %v463_v56  ;;  %vm467_vm6 = vmor %vm465_vm15, %vm466_vm4 }
  0xe0   :  { %v434_v3 = vadd.f32 %v2166_v18, %v433_v63  ;;  %v383_v63 = vsel %vm380_vm9, %v382_v57, %v378_v42  ;;  %v469_v55 = vand.u32 2147483647, %v2155_v21  ;;  %v2277_v25 = vpop.permute.xlu1 %749  ;;  %v898_v57 = vsel %vm887_vm1, %v1593_v26, %v1802_v54 }
  0xe1   :  { %791 = vrot.lane.b32.xlu2 %v2197_v20, %s1430_s11  ;;  %v457_v58 = vor.u32 1.1754944e-38, %v456_v6  ;;  %v472_v59 = vor.u32 1.1754944e-38, %v471_v33  ;;  %v468_v21 = vsel %vm467_vm6, %v2188_v27, %v464_v60  ;;  %v915_v27 = vsel %vm904_vm2, %v898_v57, %v1747_v9 }
  0xe2   :  { %v438_v4 = vsel %vm2248_vm12, %v2166_v18, %v434_v3  ;;  %vm470_vm7 = vcmp.eq.f32.partialorder %v469_v55, 8.507059e+37  ;;  %v932_v6 = vsel %vm921_vm3, %v915_v27, %v1989_v24  ;;  %v897_v26 = vsel %vm887_vm1, %v1615_v31, %v1839_v30  ;;  %v1391_v30 = vld [vmem:[%s2602_s2 + $0x50] sm:$0xff] }
  0xe3   :  { %675 = vrot.lane.b32.xlu0 %v2096_v11, %s1433_s4  ;;  %v533_v11 = vsel %vm2215_vm5, %v532_v12, %v528_v62  ;;  %vm455_vm5 = vcmp.eq.f32.partialorder %v454_v44, 8.507059e+37  ;;  %v2275_v18 = vsel %vm440_vm14, %v442_v32, %v438_v4  ;;  %v2279_v39 = vpop.permute.xlu0 %801  ;;  %v473_v48 = vsel %vm470_vm7, %v472_v59, %v468_v21 }
  0xe4   :  { %v458_v62 = vsel %vm455_vm5, %v457_v58, %v453_v1  ;;  %v914_v54 = vsel %vm904_vm2, %v897_v26, %v1765_v19  ;;  %v896_v31 = vsel %vm887_vm1, %v1629_v34, %v1913_v52  ;;  %v895_v34 = vsel %vm887_vm1, %v1643_v37, %v1985_v15  ;;  %v1392_v52 = vld [vmem:[%s2602_s2 + $0x48] sm:$0xff] }
  0xe5   :  { %v2234_v8 = vpop.permute.xlu2 %980  ;;  %677 = vrot.lane.b32.xlu1 %v533_v11, %s1433_s4  ;;  %v931_v24 = vsel %vm921_vm3, %v914_v54, %v2060_v51  ;;  %v913_v19 = vsel %vm904_vm2, %v896_v31, %v1789_v41  ;;  %v912_v41 = vsel %vm904_vm2, %v895_v34, %v1820_v5  ;;  %v894_v37 = vsel %vm887_vm1, %v1657_v40, %v2056_v14  ;;  %v1394_v40 = vld [vmem:[%s2602_s2 + $0x40] sm:$0xff]  ;;  %v2685_v31 = vld [vmem:[#allocation7_spill] sm:$0xff] }
  0xe6   :  { %v930_v44 = vsel %vm921_vm3, %v913_v19, %v2139_v35  ;;  %v929_v35 = vsel %vm921_vm3, %v912_v41, %v2174_v29  ;;  %v892_v5 = vsel %vm887_vm1, %v1685_v46, %v2172_v36  ;;  %v1393_v29 = vld [vmem:[%s2602_s2 + $0x58] sm:$0xff]  ;;  %v911_v4 = vsel %vm904_vm2, %v894_v37, %v1873_v23 }
  0xe7   :  { %v543_v14 = vand.u32 2147483647, %v1813_v0  ;;  %v535_v46 = vand.u32 2147483647, %v1760_v16  ;;  %v909_v36 = vsel %vm904_vm2, %v892_v5, %v2021_v61  ;;  %v928_v58 = vsel %vm921_vm3, %v911_v4, %v2225_v10  ;;  %v2687_v37 = vld [vmem:[#allocation15_spill] sm:$0xff] }
  0xe8   :  { %v2294_v3 = vpop.permute.xlu1 %845  ;;  %v926_v33 = vsel %vm921_vm3, %v909_v36, %v2219_v7  ;;  %v1395_v7 = vld [vmem:[%s2602_s2 + $0x38] sm:$0xff]  ;;  %v541_v10 = vand.u32 2147483647, %v1770_v22  ;;  %v893_v21 = vsel %vm887_vm1, %v1671_v43, %v1955_v17  ;;  %v891_v57 = vsel %vm887_vm1, %v1699_v50, %v2277_v25 }
  0xe9   :  { %593 = vrot.lane.b32.xlu2 %v383_v63, %s1434_s18  ;;  %v559_v23 = vadd.f32 1e-10, %v543_v14  ;;  %v551_v60 = vadd.f32 1e-10, %v535_v46  ;;  %v908_v54 = vsel %vm904_vm2, %v891_v57, %v2109_v53  ;;  %v547_v19 = vand.u32 2147483647, %v2685_v31 }
  0xea   :  { %v557_v27 = vadd.f32 1e-10, %v541_v10  ;;  %v925_v50 = vsel %vm921_vm3, %v908_v54, %v2294_v3  ;;  %v2686_v3 = vld [vmem:[#allocation5_spill] sm:$0xff]  ;;  %vm1118_vm9 = vcmask 424960  }
  0xeb   :  { %601 = vrot.lane.b32.xlu0 %v2275_v18, %s1434_s18  ;;  %v2292_v42 = vpop.permute.xlu0 %1064  ;;  %v563_v41 = vadd.f32 1e-10, %v547_v19 }
  0xed   :  { %v2283_v12 = vpop.permute.xlu2 %795  ;;  %603 = vrot.lane.b32.xlu1 %v458_v62, %s1434_s18 }
  0xf0   :  { %v2315_v9 = vpop.permute.xlu1 %747 }
  0xf1   :  { %605 = vrot.lane.b32.xlu2 %v473_v48, %s1434_s18 }
  0xf3   :  { %613 = vrot.lane.b32.xlu0 %v533_v11, %s1434_s18  ;;  %v2311_v11 = vpop.permute.xlu0 %1062 }
  0xf5   :  { %v2296_v13 = vpop.permute.xlu2 %978  ;;  %743 = vrot.lane.b32.xlu1 %v2197_v20, %s1428_s29  ;;  %s1203_s29 = sshll.u32 %s2606_s6, 4  ;;  %s1204_s29 = int_to_ptr.hbm [resolvable:$true] %s1203_s29 }
  0xf8   :  { %v2334_v51 = vpop.permute.xlu1 %843 }
  0xf9   :  { %974 = vrot.lane.b32.xlu2 %v932_v6, %s1432_s10 }
  0xfb   :  { %667 = vrot.lane.b32.xlu0 %v458_v62, %s1433_s4  ;;  %v2332_v45 = vpop.permute.xlu0 %1060 }
  0xfd   :  { %839 = vrot.lane.b32.xlu1 %v2197_v20, %s1429_s30  ;;  %v2317_v56 = vpop.permute.xlu2 %793 }
 0x100   :  { %v2359_v15 = vpop.permute.xlu1 %745 }
 0x101   :  { %972 = vrot.lane.b32.xlu2 %v931_v24, %s1432_s10 }
 0x103   :  { %657 = vrot.lane.b32.xlu0 %v383_v63, %s1433_s4  ;;  %v2354_v63 = vpop.permute.xlu0 %1058 }
 0x105   :  { %1054 = vrot.lane.b32.xlu1 %v1391_v30, %s1431_s24  ;;  %v2338_v32 = vpop.permute.xlu2 %976  ;;  %v890_v30 = vsel %vm887_vm1, %v2686_v3, %v2315_v9 }
 0x108   :  { %v2387_v59 = vpop.permute.xlu1 %841 }
 0x109   :  { %970 = vrot.lane.b32.xlu2 %v930_v44, %s1432_s10 }
 0x10b   :  { %669 = vrot.lane.b32.xlu0 %v473_v48, %s1433_s4  ;;  %v910_v48 = vsel %vm904_vm2, %v893_v21, %v2279_v39  ;;  %v1401_v21 = vld [vmem:[%s2602_s2 + $0x18] sm:$0xff] }
 0x10c   :  { %v927_v26 = vsel %vm921_vm3, %v910_v48, %v2137_v49  ;;  %v1397_v49 = vld [vmem:[%s2602_s2 + $0x20] sm:$0xff] }
 0x10d   :  { %1052 = vrot.lane.b32.xlu1 %v1392_v52, %s1431_s24  ;;  %v2364_v28 = vpop.permute.xlu2 %649  ;;  %v907_v52 = vsel %vm904_vm2, %v890_v30, %v2283_v12  ;;  %v1399_v12 = vld [vmem:[%s2602_s2 + $0x30] sm:$0xff] }
 0x10e   :  { %v924_v9 = vsel %vm921_vm3, %v907_v52, %v2334_v51 }
 0x111   :  { %968 = vrot.lane.b32.xlu2 %v929_v35, %s1432_s10 }
 0x113   :  { %1056 = vrot.lane.b32.xlu0 %v1393_v29, %s1431_s24 }
 0x115   :  { %1050 = vrot.lane.b32.xlu1 %v1394_v40, %s1431_s24 }
 0x119   :  { %966 = vrot.lane.b32.xlu2 %v928_v58, %s1432_s10  ;;  %v1400_v58 = vld [vmem:[%s2602_s2 + $0x8] sm:$0xff] }
 0x11b   :  { %v600_v55 = vpop.permute.xlu2 %599  ;;  %665 = vrot.lane.b32.xlu0 %v2275_v18, %s1433_s4  ;;  %v1396_v18 = vld [vmem:[%s2602_s2 + $0x28] sm:$0xff] }
 0x11c   :  { %v584_v1 = vpop.permute.xlu0 %583  ;;  %v2389_v62 = vmul.f32 %v600_v55, %v559_v23  ;;  %v648_v39 = vpop.permute.xlu1 %647 }
 0x11d   :  { %v2391_v61 = vmul.f32 %v584_v1, %v551_v60  ;;  %1048 = vrot.lane.b32.xlu1 %v1395_v7, %s1431_s24  ;;  %v2688_v60 = vld [vmem:[#allocation11_spill] sm:$0xff]  ;;  %v2689_v1 = vld [vmem:[#allocation13_spill] sm:$0xff] }
 0x11e   :  { %v538_v7 = vand.u32 2147483647, %v2689_v1 }
 0x121   :  { %1044 = vrot.lane.b32.xlu2 %v1396_v18, %s1431_s24  ;;  %v2690_v18 = vld [vmem:[#allocation6_spill] sm:$0xff] }
 0x122   :  { %v889_v48 = vsel %vm887_vm1, %v2690_v18, %v2359_v15 }
 0x123   :  { %v2410_v6 = vpop.permute.xlu2 %611  ;;  %663 = vrot.lane.b32.xlu0 %v2031_v38, %s1433_s4  ;;  %v539_v38 = vand.u32 2147483647, %v1869_v2 }
 0x124   :  { %v596_v43 = vpop.permute.xlu0 %595 }
 0x125   :  { %v2414_v17 = vmul.f32 %v596_v43, %v557_v27  ;;  %964 = vrot.lane.b32.xlu1 %v927_v26, %s1432_s10  ;;  %v555_v44 = vadd.f32 1e-10, %v539_v38  ;;  %v554_v27 = vadd.f32 1e-10, %v538_v7  ;;  %v2474_v26 = vmul.f32 %v648_v39, %v2391_v61  ;;  %v2695_v7 = vld [vmem:[#allocation22_spill] sm:$0xff] }
 0x129   :  { %960 = vrot.lane.b32.xlu2 %v925_v50, %s1432_s10  ;;  %v906_v50 = vsel %vm904_vm2, %v889_v48, %v2317_v56  ;;  %v2691_v56 = vld [vmem:[#allocation21_spill] sm:$0xff] }
 0x12b   :  { %v592_v25 = vpop.permute.xlu2 %591  ;;  %661 = vrot.lane.b32.xlu0 %v1967_v47, %s1433_s4  ;;  %v2431_v53 = vpop.permute.xlu1 %597  ;;  %v1398_v47 = vld [vmem:[%s2602_s2 + $0x10] sm:$0xff] }
 0x12c   :  { %v635_v34 = vmul.f32 %v592_v25, %v555_v44  ;;  %v2692_v44 = vld [vmem:[#allocation12_spill] sm:$0xff] }
 0x12d   :  { %v608_v24 = vpop.permute.xlu0 %607  ;;  %1042 = vrot.lane.b32.xlu1 %v1397_v49, %s1431_s24  ;;  %v227_v49 = vmax.f32 %v2685_v31, 0.0 }
 0x12e   :  { %v643_v5 = vmul.f32 %v608_v24, %v563_v41  ;;  %v923_v24 = vsel %vm921_vm3, %v906_v50, %v2387_v59  ;;  %v549_v59 = vand.u32 2147483647, %v2692_v44 }
 0x130   :  { %v565_v52 = vadd.f32 1e-10, %v549_v59 }
 0x131   :  { %1038 = vrot.lane.b32.xlu2 %v1398_v47, %s1431_s24 }
 0x133   :  { %v656_v35 = vpop.permute.xlu2 %655  ;;  %659 = vrot.lane.b32.xlu0 %v2687_v37, %s1433_s4  ;;  %v645_v37 = vmul.f32 %v2410_v6, %v565_v52  ;;  %v229_v6 = vmax.f32 %v2692_v44, 0.0 }
 0x134   :  { %v2445_v29 = vmul.f32 %v656_v35, %v635_v34  ;;  %v2693_v34 = vld [vmem:[#allocation14_spill] sm:$0xff] }
 0x135   :  { %v672_v4 = vpop.permute.xlu0 %671  ;;  %958 = vrot.lane.b32.xlu1 %v924_v9, %s1432_s10  ;;  %v550_v41 = vand.u32 2147483647, %v2693_v34  ;;  %v2694_v35 = vld [vmem:[#allocation10_spill] sm:$0xff] }
 0x136   :  { %v707_v40 = vmul.f32 %v672_v4, %v643_v5  ;;  %v548_v31 = vand.u32 2147483647, %v2694_v35 }
 0x137   :  { %v610_v14 = vpop.permute.xlu1 %609  ;;  %v566_v5 = vadd.f32 1e-10, %v550_v41 }
 0x138   :  { %v1014_v46 = vmul.f32 %v2296_v13, %v707_v40  ;;  %v537_v13 = vand.u32 2147483647, %v2688_v60  ;;  %v564_v4 = vadd.f32 1e-10, %v548_v31 }
 0x13a   :  { %v553_v10 = vadd.f32 1e-10, %v537_v13  ;;  %v1095_v61 = vsel %vm1082_vm8, %v227_v49, %v1014_v46  ;;  %v230_v13 = vmax.f32 %v2693_v34, 0.0 }
 0x13b   :  { %1046 = vrot.lane.b32.xlu0 %v1399_v12, %s1431_s24  ;;  %v1111_v39 = vsel %vm141_vm0, %v1095_v61, %v2354_v63  ;;  %v792_v3 = vpop.permute.xlu2 %791  ;;  %v644_v12 = vmul.f32 %v610_v14, %v564_v4 }
 0x13d   :  { %v2455_v36 = vpop.permute.xlu0 %585  ;;  %1036 = vrot.lane.b32.xlu1 %v1400_v58, %s1431_s24 }
 0x13f   :  { %v588_v51 = vpop.permute.xlu1 %587 }
 0x140   :  { %v633_v57 = vmul.f32 %v588_v51, %v553_v10 }
 0x143   :  { %962 = vrot.lane.b32.xlu0 %v926_v33, %s1432_s10  ;;  %v2495_v63 = vpop.permute.xlu2 %593 }
 0x145   :  { %v674_v23 = vpop.permute.xlu0 %673 }
 0x147   :  { %v590_v55 = vpop.permute.xlu1 %589 }
 0x148   :  { %v634_v54 = vmul.f32 %v590_v55, %v554_v27  ;;  %v708_v55 = vmul.f32 %v674_v23, %v644_v12 }
 0x14b   :  { %1040 = vrot.lane.b32.xlu0 %v1401_v21, %s1431_s24  ;;  %v2696_v21 = vld [vmem:[#allocation20_spill] sm:$0xff]  ;;  %v606_v50 = vpop.permute.xlu2 %605 }
 0x14d   :  { %v652_v33 = vpop.permute.xlu0 %651 }
 0x14e   :  { %v2471_v43 = vmul.f32 %v652_v33, %v633_v57  ;;  %v1015_v33 = vmul.f32 %v2234_v8, %v708_v55 }
 0x14f   :  { %v654_v25 = vpop.permute.xlu1 %653 }
 0x150   :  { %v2478_v38 = vmul.f32 %v654_v25, %v634_v54  ;;  %v228_v54 = vmax.f32 %v2694_v35, 0.0 }
 0x152   :  { %v1096_v8 = vsel %vm1082_vm8, %v228_v54, %v1015_v33 }
 0x153   :  { %956 = vrot.lane.b32.xlu0 %v923_v24, %s1432_s10  ;;  %v1112_v49 = vsel %vm141_vm0, %v1096_v8, %v2332_v45  ;;  %v975_v59 = vpop.permute.xlu2 %974 }
 0x155   :  { %v676_v15 = vpop.permute.xlu0 %675 }
 0x156   :  { %v709_v40 = vmul.f32 %v676_v15, %v645_v37 }
 0x157   :  { %v678_v19 = vpop.permute.xlu1 %677 }
 0x158   :  { %v1016_v10 = vmul.f32 %v2695_v7, %v709_v40 }
 0x15a   :  { %v1097_v23 = vsel %vm1082_vm8, %v229_v6, %v1016_v10 }
 0x15b   :  { %1034 = vrot.lane.b32.xlu0 %v2691_v56, %s1431_s24  ;;  %v2698_v56 = vld [vmem:[#allocation17_spill] sm:$0xff]  ;;  %v973_v4 = vpop.permute.xlu2 %972 }
 0x15c   :  { %v225_v40 = vmax.f32 %v2698_v56, 0.0 }
 0x15d   :  { %v2489_v30 = vpop.permute.xlu0 %601 }
 0x15f   :  { %v604_v47 = vpop.permute.xlu1 %603 }
 0x165   :  { %v614_v9 = vpop.permute.xlu0 %613 }
 0x166   :  { %v646_v46 = vmul.f32 %v614_v9, %v566_v5 }
 0x167   :  { %v744_v58 = vpop.permute.xlu1 %743 }
 0x168   :  { %v710_v51 = vmul.f32 %v678_v19, %v646_v46  ;;  %v888_v57 = vsel %vm887_vm1, %v2197_v20, %v744_v58  ;;  %v1113_v20 = vsel %vm141_vm0, %v1097_v23, %v2311_v11  ;;  %v2697_v19 = vld [vmem:[#allocation18_spill] sm:$0xff]  ;;  %v2699_v58 = vld [vmem:[#allocation16_spill] sm:$0xff]  ;;  %v2700_v23 = vld [vmem:[#allocation9_spill] sm:$0xff] }
 0x169   :  { %v905_v24 = vsel %vm904_vm2, %v888_v57, %v792_v3  ;;  %v546_v61 = vand.u32 2147483647, %v2697_v19  ;;  %v545_v3 = vand.u32 2147483647, %v2698_v56  ;;  %v226_v45 = vmax.f32 %v2697_v19, 0.0 }
 0x16a   :  { %v1017_v18 = vmul.f32 %v2696_v21, %v710_v51  ;;  %v971_v21 = vpop.permute.xlu2 %970  ;;  %v224_v6 = vmax.f32 %v2699_v58, 0.0  ;;  %v542_v54 = vand.u32 2147483647, %v2700_v23 }
 0x16b   :  { %v562_v44 = vadd.f32 1e-10, %v546_v61  ;;  %v561_v11 = vadd.f32 1e-10, %v545_v3  ;;  %v222_v3 = vmax.f32 %v2700_v23, 0.0 }
 0x16c   :  { %v1098_v48 = vsel %vm1082_vm8, %v230_v13, %v1017_v18 }
 0x16d   :  { %v668_v27 = vpop.permute.xlu0 %667  ;;  %v1114_v14 = vsel %vm141_vm0, %v1098_v48, %v2292_v42  ;;  %v642_v34 = vmul.f32 %v606_v50, %v562_v44  ;;  %v641_v52 = vmul.f32 %v604_v47, %v561_v11 }
 0x16e   :  { %1280 = vmatpush.xpose.msk.msra.mxu1 %vm1118_vm9, %v1114_v14 }
 0x16f   :  { %v840_v25 = vpop.permute.xlu1 %839  ;;  %v705_v37 = vmul.f32 %v668_v27, %v641_v52 }
 0x170   :  { %v922_v15 = vsel %vm921_vm3, %v905_v24, %v840_v25 }
 0x171   :  { %954 = vrot.lane.b32.xlu2 %v922_v15, %s1432_s10  ;;  %v1012_v9 = vmul.f32 %v975_v59, %v705_v37  ;;  %v558_v15 = vadd.f32 1e-10, %v542_v54  ;;  %v221_v37 = vmax.f32 %v1770_v22, 0.0  ;;  %v1115_v22 = vld [vmem:[%s2605_s5] sm:$0x1] }
 0x172   :  { %1281 = vmatpush.xpose.msk.msra.mxu1 %vm1118_vm9, %v1113_v20  ;;  %v969_v25 = vpop.permute.xlu2 %968 }
 0x173   :  { %v1093_v47 = vsel %vm1082_vm8, %v225_v40, %v1012_v9  ;;  %v638_v19 = vmul.f32 %v2431_v53, %v558_v15 }
 0x175   :  { %v2517_v42 = vpop.permute.xlu0 %657 }
 0x176   :  { %1282 = vmatpush.xpose.msk.msra.mxu1 %vm1118_vm9, %v1112_v49 }
 0x177   :  { %v1055_v41 = vpop.permute.xlu1 %1054 }
 0x17a   :  { %1283 = vmatpush.xpose.msk.msra.mxu1 %vm1118_vm9, %v1111_v39  ;;  %v544_v39 = vand.u32 2147483647, %v2699_v58 }
 0x17c   :  { %v560_v55 = vadd.f32 1e-10, %v544_v39 }
 0x17d   :  { %v670_v35 = vpop.permute.xlu0 %669 }
 0x17e   :  { %v706_v31 = vmul.f32 %v670_v35, %v642_v34  ;;  %v640_v7 = vmul.f32 %v2489_v30, %v560_v55  ;;  %v223_v30 = vmax.f32 %v1813_v0, 0.0  ;;  %v967_v0 = vpop.permute.xlu2 %966 }
 0x17f   :  { %v1053_v51 = vpop.permute.xlu1 %1052 }
 0x180   :  { %v1013_v5 = vmul.f32 %v2338_v32, %v706_v31  ;;  %v1109_v32 = vsel %vm141_vm0, %v1093_v47, %v1055_v41 }
 0x182   :  { %v1094_v12 = vsel %vm1082_vm8, %v226_v45, %v1013_v5 }
 0x185   :  { %v1057_v46 = vpop.permute.xlu0 %1056 }
 0x186   :  { %v1110_v13 = vsel %vm141_vm0, %v1094_v12, %v1057_v46  ;;  %v1045_v40 = vpop.permute.xlu2 %1044 }
 0x187   :  { %1284 = vmatpush.xpose.msk.msra.mxu1 %vm1118_vm9, %v1110_v13  ;;  %v1051_v48 = vpop.permute.xlu1 %1050  ;;  %v219_v13 = vmax.f32 %v1869_v2, 0.0  ;;  %v217_v2 = vmax.f32 %v2688_v60, 0.0 }
 0x18b   :  { %1285 = vmatpush.xpose.msk.msra.mxu1 %vm1118_vm9, %v1109_v32 }
 0x18d   :  { %v666_v10 = vpop.permute.xlu0 %665 }
 0x18e   :  { %v704_v18 = vmul.f32 %v666_v10, %v640_v7  ;;  %v961_v47 = vpop.permute.xlu2 %960 }
 0x18f   :  { %v1049_v20 = vpop.permute.xlu1 %1048  ;;  %v1005_v10 = vmul.f32 %v961_v47, %v2478_v38 }
 0x190   :  { %v1011_v57 = vmul.f32 %v973_v4, %v704_v18  ;;  %v2702_v18 = vld [vmem:[#allocation8_spill] sm:$0xff] }
 0x192   :  { %v1092_v27 = vsel %vm1082_vm8, %v224_v6, %v1011_v57  ;;  %v536_v6 = vand.u32 2147483647, %v2702_v18 }
 0x193   :  { %v1108_v14 = vsel %vm141_vm0, %v1092_v27, %v1053_v51  ;;  %v1435_v51 = vmov 52  }
 0x194   :  { %1286 = vmatpush.xpose.msk.msra.mxu1 %vm1118_vm9, %v1108_v14  ;;  %1323 = vset.pattern.permute.xlu1 %v1435_v51  ;;  %v552_v14 = vadd.f32 1e-10, %v536_v6 }
 0x195   :  { %v664_v33 = vpop.permute.xlu0 %663  ;;  %1324 = vset.pattern.permute.xlu0 %v1435_v51  ;;  %1190 = vperm.xlu1 %1323, %v1115_v22  }
 0x196   :  { %v703_v50 = vmul.f32 %v664_v33, %v2389_v62  ;;  %v2701_v62 = vld [vmem:[#allocation19_spill] sm:$0xff]  ;;  %v1039_v23 = vpop.permute.xlu2 %1038  ;;  %v632_v54 = vmul.f32 %v2455_v36, %v552_v14  ;;  %v215_v36 = vmax.f32 %v1760_v16, 0.0 }
 0x197   :  { %v540_v59 = vand.u32 2147483647, %v2701_v62  ;;  %v965_v41 = vpop.permute.xlu1 %964  ;;  %v220_v46 = vmax.f32 %v2701_v62, 0.0 }
 0x198   :  { %v1010_v24 = vmul.f32 %v971_v21, %v703_v50 }
 0x199   :  { %v556_v52 = vadd.f32 1e-10, %v540_v59 }
 0x19a   :  { %v1091_v8 = vsel %vm1082_vm8, %v223_v30, %v1010_v24 }
 0x19b   :  { %v1107_v49 = vsel %vm141_vm0, %v1091_v8, %v1051_v48  ;;  %v636_v31 = vmul.f32 %v2495_v63, %v556_v52  ;;  %v218_v48 = vmax.f32 %v2689_v1, 0.0  ;;  %v696_v1 = vmul.f32 %v2364_v28, %v632_v54 }
 0x19c   :  { %1287 = vmatpush.xpose.msk.msra.mxu1 %vm1118_vm9, %v1107_v49 }
 0x19d   :  { %v662_v61 = vpop.permute.xlu0 %661  ;;  %v700_v45 = vmul.f32 %v2517_v42, %v636_v31 }
 0x19e   :  { %v702_v56 = vmul.f32 %v662_v61, %v638_v19  ;;  %v1326_v61 = vld [vmem:[%s2605_s5] ss:$0 sm:$0xff] }
 0x19f   :  { %v1007_v4 = vmul.f32 %v965_v41, %v700_v45  ;;  %v1043_v58 = vpop.permute.xlu1 %1042 }
 0x1a0   :  { %v1009_v44 = vmul.f32 %v969_v25, %v702_v56 }
 0x1a2   :  { %v1090_v11 = vsel %vm1082_vm8, %v222_v3, %v1009_v44 }
 0x1a3   :  { %v1106_v34 = vsel %vm141_vm0, %v1090_v11, %v1049_v20 }
 0x1a4   :  { %1288 = vmatpush.xpose.msk.msra.mxu1 %vm1118_vm9, %v1106_v34 }
 0x1a5   :  { %v660_v35 = vpop.permute.xlu0 %659 }
 0x1a6   :  { %v701_v53 = vmul.f32 %v660_v35, %v2414_v17  ;;  %v1088_v17 = vsel %vm1082_vm8, %v220_v46, %v1007_v4 }
 0x1a7   :  { %v1104_v63 = vsel %vm141_vm0, %v1088_v17, %v1045_v40  ;;  %v959_v32 = vpop.permute.xlu1 %958 }
 0x1a8   :  { %v1008_v5 = vmul.f32 %v967_v0, %v701_v53  ;;  %v1004_v57 = vmul.f32 %v959_v32, %v2471_v43  ;;  %v216_v43 = vmax.f32 %v2702_v18, 0.0 }
 0x1aa   :  { %v1089_v9 = vsel %vm1082_vm8, %v221_v37, %v1008_v5  ;;  %v1085_v38 = vsel %vm1082_vm8, %v217_v2, %v1004_v57 }
 0x1ab   :  { %v1101_v50 = vsel %vm141_vm0, %v1085_v38, %v1039_v23 }
 0x1ad   :  { %v1047_v12 = vpop.permute.xlu0 %1046 }
 0x1ae   :  { %v1105_v39 = vsel %vm141_vm0, %v1089_v9, %v1047_v12 }
 0x1af   :  { %1289 = vmatpush.xpose.msk.msra.mxu1 %vm1118_vm9, %v1105_v39  ;;  %v1037_v25 = vpop.permute.xlu1 %1036 }
 0x1b3   :  { %1290 = vmatpush.xpose.msk.msra.mxu1 %vm1118_vm9, %v1104_v63 }
 0x1b5   :  { %v963_v42 = vpop.permute.xlu0 %962 }
 0x1b6   :  { %v1006_v55 = vmul.f32 %v963_v42, %v2445_v29  ;;  %v1086_v29 = vsel %vm1082_vm8, %v218_v48, %v1005_v10 }
 0x1b8   :  { %v1087_v7 = vsel %vm1082_vm8, %v219_v13, %v1006_v55 }
 0x1b9   :  { %v1103_v21 = vsel %vm141_vm0, %v1087_v7, %v1043_v58 }
 0x1ba   :  { %1291 = vmatpush.xpose.msk.msra.mxu1 %vm1118_vm9, %v1103_v21 }
 0x1bd   :  { %v1041_v27 = vpop.permute.xlu0 %1040 }
 0x1be   :  { %v1102_v33 = vsel %vm141_vm0, %v1086_v29, %v1041_v27 }
 0x1bf   :  { %1292 = vmatpush.xpose.msk.msra.mxu1 %vm1118_vm9, %v1102_v33 }
 0x1c3   :  { %1293 = vmatpush.xpose.msk.msra.mxu1 %vm1118_vm9, %v1101_v50 }
 0x1c5   :  { %v957_v60 = vpop.permute.xlu0 %956 }
 0x1c6   :  { %v1003_v30 = vmul.f32 %v957_v60, %v696_v1 }
 0x1c8   :  { %v1084_v24 = vsel %vm1082_vm8, %v216_v43, %v1003_v30 }
 0x1c9   :  { %v1100_v15 = vsel %vm141_vm0, %v1084_v24, %v1037_v25 }
 0x1ca   :  { %1294 = vmatpush.xpose.msk.msra.mxu1 %vm1118_vm9, %v1100_v15 }
 0x1cb   :  { %v955_v20 = vpop.permute.xlu2 %954 }
 0x1cc   :  { %v1002_v8 = vmul.f32 %v955_v20, %v2474_v26 }
 0x1cd   :  { %v1035_v49 = vpop.permute.xlu0 %1034 }
 0x1ce   :  { %v1083_v19 = vsel %vm1082_vm8, %v215_v36, %v1002_v8 }
 0x1cf   :  { %v1099_v28 = vsel %vm141_vm0, %v1083_v19, %v1035_v49 }
 0x1d0   :  { %1295 = vmatpush.xpose.msk.msra.mxu1 %vm1118_vm9, %v1099_v28 }
 0x1d3   :  { %1296 = vmatmul.msk.f32.vlgmr.msra.gmra.mxu1 %vm1118_vm9, %v1326_v61 }
 0x207   :  { %v1191_v56 = vpop.permute.xlu1 %1190 }
 0x208   :  { %v1193_v3 = vperm.slane %v1191_v56, 0 }
 0x250   :  { %v1186_v16 = vpop.f32.mrf.mxu1 }
 0x251   :  { %v1194_v26 = vadd.f32 %v1193_v3, %v1186_v16 }
 0x253   :  { %1195 = vst [vmem:[#allocation2] sm:$0x1] %v1194_v26 }
 0x254   :  { %1206 = dma.vmem_to_hbm [thread:$0]  %s1202_s20, 16, %s1204_s29, [#allocation3]  }
 0x255   :  { %1426 = dma.done.wait [#allocation3], 16  }
 0x256   :  { %1427 = vsyncadd [#allocation3], 4294967280 }
 0x257   :  { %1211 = vsyncpa [#allocation3], 1 }

</bundles_post_ra>
